<compile_context>
chip_gen: v7x
topology: tpu7x:2x2x1
jax: 0.10.0
libtpu: 0.0.40
codegen_flags: <defaults>
</compile_context>

<pallas_src>
import functools

import jax
import jax.numpy as jnp
from jax.experimental import pallas as pl
from jax.experimental.pallas import tpu as pltpu

BN_EPS = 1e-5
DIMS = [None, 1024, 512, 256, 128]   # hidden widths (index 1..4)
PAD_OUT = 128                        # lane-dense padded width of the final layer


def _fused_mlp_kernel(x_ref,
                      w1, g1, be1,
                      w2_hbm, g2, be2,
                      w3_hbm, g3, be3,
                      w4, g4, be4,
                      w5, b5,
                      o_ref,
                      w2_vmem, w3_vmem, sem):
    """Whole network in one kernel invocation.

    w2_hbm / w3_hbm are raw HBM refs (memory_space=pl.ANY); their DMA into the
    w2_vmem / w3_vmem scratch buffers is started immediately so it overlaps the
    fc1 + bn1 compute, and waited on just before the corresponding matmul.
    """
    cp2 = pltpu.make_async_copy(w2_hbm, w2_vmem, sem.at[0])
    cp3 = pltpu.make_async_copy(w3_hbm, w3_vmem, sem.at[1])
    cp2.start()
    cp3.start()

    def bn_relu(z, g_ref, be_ref):
        # Training-mode BatchNorm1d (biased variance, eps=1e-5, affine) + ReLU.
        # Single-pass stats: both reductions issue before any dependent VPU op.
        inv_n = 1.0 / z.shape[0]
        s1 = jnp.sum(z, axis=0, keepdims=True)
        s2 = jnp.sum(z * z, axis=0, keepdims=True)
        mean = s1 * inv_n
        var = s2 * inv_n - mean * mean
        scale = g_ref[...] * jax.lax.rsqrt(var + BN_EPS)
        shift = be_ref[...] - mean * scale
        y = z * scale + shift
        # activation_fn := nn.ReLU; cast down for the next MXU pass.
        return jnp.maximum(y, 0.0).astype(jnp.bfloat16)

    h = x_ref[...].astype(jnp.bfloat16)

    # Layer 1 (fc1 bias omitted: exactly cancelled by BN mean-centering).
    z = jnp.dot(h, w1[...], preferred_element_type=jnp.float32)
    h = bn_relu(z, g1, be1)

    # Layer 2 — wait for the overlapped fc2 weight DMA.
    cp2.wait()
    z = jnp.dot(h, w2_vmem[...], preferred_element_type=jnp.float32)
    h = bn_relu(z, g2, be2)

    # Layer 3 — wait for the overlapped fc3 weight DMA.
    cp3.wait()
    z = jnp.dot(h, w3_vmem[...], preferred_element_type=jnp.float32)
    h = bn_relu(z, g3, be3)

    # Layer 4.
    z = jnp.dot(h, w4[...], preferred_element_type=jnp.float32)
    h = bn_relu(z, g4, be4)

    # Final layer: plain linear (with bias), f32, lane-dense (B, 128) slab.
    o_ref[...] = jnp.dot(h, w5[...], preferred_element_type=jnp.float32) + b5[...]


def fused_mlp(x, params):
    """x: (B, in_dim) f32.  Returns (B, PAD_OUT) f32 (zero-padded fc5 output)."""
    B, K = x.shape

    args = [x]
    in_specs = [pl.BlockSpec((B, K), lambda i: (0, 0))]

    def add_vmem(name):
        a = params[name]
        args.append(a)
        in_specs.append(pl.BlockSpec(a.shape, lambda i: (0, 0)))

    def add_hbm(name):
        args.append(params[name])
        in_specs.append(pl.BlockSpec(memory_space=pl.ANY))

    # fc1 / fc4: small weights, auto-DMA'd by BlockSpec.
    # fc2 / fc3: large weights, raw HBM refs + manual overlapped DMA in-kernel.
    add_vmem("fc1_w"); add_vmem("bn1_g"); add_vmem("bn1_b")
    add_hbm("fc2_w");  add_vmem("bn2_g"); add_vmem("bn2_b")
    add_hbm("fc3_w");  add_vmem("bn3_g"); add_vmem("bn3_b")
    add_vmem("fc4_w"); add_vmem("bn4_g"); add_vmem("bn4_b")
    add_vmem("fc5_w"); add_vmem("fc5_b")

    return pl.pallas_call(
        _fused_mlp_kernel,
        out_shape=jax.ShapeDtypeStruct((B, PAD_OUT), jnp.float32),
        grid_spec=pltpu.PrefetchScalarGridSpec(
            num_scalar_prefetch=0,
            grid=(1,),
            in_specs=in_specs,
            out_specs=pl.BlockSpec((B, PAD_OUT), lambda i: (0, 0)),
            scratch_shapes=[
                pltpu.VMEM((DIMS[1], DIMS[2]), jnp.bfloat16),   # fc2_w landing buf
                pltpu.VMEM((DIMS[2], DIMS[3]), jnp.bfloat16),   # fc3_w landing buf
                pltpu.SemaphoreType.DMA((2,)),
            ],
        ),
        compiler_params=pltpu.CompilerParams(
            dimension_semantics=("arbitrary",)),
    )(*args)


def init_params(key, in_dim, out_dim):
    """Deterministic PyTorch-style init (uniform(-1/sqrt(fan_in), +1/sqrt(fan_in))).

    Weights are stored bf16 (MXU inputs); BN params and fc5 bias stay f32 and
    are pre-shaped (1, N).  fc1..fc4 biases are omitted entirely: they are
    mathematically cancelled by the training-mode BatchNorm mean-centering.
    fc5 is zero-padded to PAD_OUT output features for lane-dense stores.
    """
    dims = [in_dim, 1024, 512, 256, 128, out_dim]
    params = {}
    for i in range(5):
        k_in, k_out = dims[i], dims[i + 1]
        key, kw, kb = jax.random.split(key, 3)
        bound = 1.0 / jnp.sqrt(float(k_in))
        w = jax.random.uniform(kw, (k_in, k_out), jnp.float32, -bound, bound)
        if i == 4:
            b = jax.random.uniform(kb, (k_out,), jnp.float32, -bound, bound)
            w = jnp.pad(w, ((0, 0), (0, PAD_OUT - k_out)))
            b = jnp.pad(b, ((0, PAD_OUT - k_out),))
            params["fc5_b"] = b.reshape(1, -1).astype(jnp.float32)
        params[f"fc{i+1}_w"] = w.astype(jnp.bfloat16)
    # BatchNorm affine params at PyTorch defaults: gamma=1, beta=0, shaped (1, N).
    for i in range(1, 5):
        n = DIMS[i]
        params[f"bn{i}_g"] = jnp.ones((1, n), jnp.float32)
        params[f"bn{i}_b"] = jnp.zeros((1, n), jnp.float32)
    return params


@functools.partial(jax.jit, static_argnames=("out_dim",))
def baseline_forward(x, params, *, out_dim):
    # x: (batch, length, channel)  ->  flatten to (batch, length*channel)
    b = x.shape[0]
    h = x.reshape(b, -1).astype(jnp.float32)
    out_padded = fused_mlp(h, params)        # (B, PAD_OUT)
    return out_padded[:, :out_dim]           # slice off the zero-padded columns


if __name__ == "__main__":
    key = jax.random.PRNGKey(0)
    k_x, k_p = jax.random.split(key)

    batch, length, channel = 8, 8, 8         # in_dim = length * channel = 64
    out_dim = 64

    x = jax.random.normal(k_x, (batch, length, channel), jnp.float32)
    params = init_params(k_p, length * channel, out_dim)

    out = baseline_forward(x, params, out_dim=out_dim)
    jax.block_until_ready(out)
    assert out.shape == (batch, out_dim), out.shape
    assert bool(jnp.all(jnp.isfinite(out))), "non-finite output"
    print("KERNEL_OK")
</pallas_src>

<mosaic_0001>
module attributes {stable_mosaic.version = 11 : i64} {
  func.func @_fused_mlp_kernel(%arg0: i32, %arg1: memref<8x64xf32, #tpu.memory_space<vmem>>, %arg2: memref<64x1024xbf16, #tpu.memory_space<vmem>>, %arg3: memref<1x1024xf32, #tpu.memory_space<vmem>>, %arg4: memref<1x1024xf32, #tpu.memory_space<vmem>>, %arg5: memref<1024x512xbf16, #tpu.memory_space<any>>, %arg6: memref<1x512xf32, #tpu.memory_space<vmem>>, %arg7: memref<1x512xf32, #tpu.memory_space<vmem>>, %arg8: memref<512x256xbf16, #tpu.memory_space<any>>, %arg9: memref<1x256xf32, #tpu.memory_space<vmem>>, %arg10: memref<1x256xf32, #tpu.memory_space<vmem>>, %arg11: memref<256x128xbf16, #tpu.memory_space<vmem>>, %arg12: memref<1x128xf32, #tpu.memory_space<vmem>>, %arg13: memref<1x128xf32, #tpu.memory_space<vmem>>, %arg14: memref<128x128xbf16, #tpu.memory_space<vmem>>, %arg15: memref<1x128xf32, #tpu.memory_space<vmem>>, %arg16: memref<8x128xf32, #tpu.memory_space<vmem>>, %arg17: memref<1024x512xbf16, #tpu.memory_space<vmem>>, %arg18: memref<512x256xbf16, #tpu.memory_space<vmem>>, %arg19: memref<2x!tpu.dma_semaphore, #tpu.memory_space<semaphore_mem>>) attributes {dimension_semantics = [#tpu.dimension_semantics<arbitrary>], iteration_bounds = array<i64: 1>, scalar_prefetch = 0 : i64, scratch_operands = 3 : i64, tpu.core_type = #tpu.core_type<tc>, window_params = [{pipeline_mode = #tpu.pipeline_mode<synchronous>, transform_indices = @transform_0, window_bounds = array<i64: 8, 64>}, {pipeline_mode = #tpu.pipeline_mode<synchronous>, transform_indices = @transform_1, window_bounds = array<i64: 64, 1024>}, {pipeline_mode = #tpu.pipeline_mode<synchronous>, transform_indices = @transform_2, window_bounds = array<i64: 1, 1024>}, {pipeline_mode = #tpu.pipeline_mode<synchronous>, transform_indices = @transform_3, window_bounds = array<i64: 1, 1024>}, {}, {pipeline_mode = #tpu.pipeline_mode<synchronous>, transform_indices = @transform_5, window_bounds = array<i64: 1, 512>}, {pipeline_mode = #tpu.pipeline_mode<synchronous>, transform_indices = @transform_6, window_bounds = array<i64: 1, 512>}, {}, {pipeline_mode = #tpu.pipeline_mode<synchronous>, transform_indices = @transform_8, window_bounds = array<i64: 1, 256>}, {pipeline_mode = #tpu.pipeline_mode<synchronous>, transform_indices = @transform_9, window_bounds = array<i64: 1, 256>}, {pipeline_mode = #tpu.pipeline_mode<synchronous>, transform_indices = @transform_10, window_bounds = array<i64: 256, 128>}, {pipeline_mode = #tpu.pipeline_mode<synchronous>, transform_indices = @transform_11, window_bounds = array<i64: 1, 128>}, {pipeline_mode = #tpu.pipeline_mode<synchronous>, transform_indices = @transform_12, window_bounds = array<i64: 1, 128>}, {pipeline_mode = #tpu.pipeline_mode<synchronous>, transform_indices = @transform_13, window_bounds = array<i64: 128, 128>}, {pipeline_mode = #tpu.pipeline_mode<synchronous>, transform_indices = @transform_14, window_bounds = array<i64: 1, 128>}, {pipeline_mode = #tpu.pipeline_mode<synchronous>, transform_indices = @transform_15, window_bounds = array<i64: 8, 128>}]} {
    %c0_i32 = arith.constant 0 : i32
    %0 = tpu.memref_slice %arg19[%c0_i32] : memref<2x!tpu.dma_semaphore, #tpu.memory_space<semaphore_mem>> -> memref<1x!tpu.dma_semaphore, #tpu.memory_space<semaphore_mem>>
    %1 = tpu.memref_squeeze %0 : memref<1x!tpu.dma_semaphore, #tpu.memory_space<semaphore_mem>> -> memref<!tpu.dma_semaphore, #tpu.memory_space<semaphore_mem>>
    tpu.enqueue_dma source(%arg5 : memref<1024x512xbf16, #tpu.memory_space<any>>) target(%arg17 : memref<1024x512xbf16, #tpu.memory_space<vmem>>) target_semaphore(%1 : memref<!tpu.dma_semaphore, #tpu.memory_space<semaphore_mem>>)
    %c1_i32 = arith.constant 1 : i32
    %2 = tpu.memref_slice %arg19[%c1_i32] : memref<2x!tpu.dma_semaphore, #tpu.memory_space<semaphore_mem>> -> memref<1x!tpu.dma_semaphore, #tpu.memory_space<semaphore_mem>>
    %3 = tpu.memref_squeeze %2 : memref<1x!tpu.dma_semaphore, #tpu.memory_space<semaphore_mem>> -> memref<!tpu.dma_semaphore, #tpu.memory_space<semaphore_mem>>
    tpu.enqueue_dma source(%arg8 : memref<512x256xbf16, #tpu.memory_space<any>>) target(%arg18 : memref<512x256xbf16, #tpu.memory_space<vmem>>) target_semaphore(%3 : memref<!tpu.dma_semaphore, #tpu.memory_space<semaphore_mem>>)
    %c0 = arith.constant 0 : index
    %c0_0 = arith.constant 0 : index
    %4 = vector.load %arg1[%c0, %c0_0] : memref<8x64xf32, #tpu.memory_space<vmem>>, vector<8x64xf32>
    %5 = arith.truncf %4 : vector<8x64xf32> to vector<8x64xbf16>
    %c0_1 = arith.constant 0 : index
    %c0_2 = arith.constant 0 : index
    %6 = vector.load %arg2[%c0_1, %c0_2] : memref<64x1024xbf16, #tpu.memory_space<vmem>>, vector<64x1024xbf16>
    %cst = arith.constant dense<0.000000e+00> : vector<8x1024xf32>
    %7 = tpu.matmul %5, %6, %cst {dimension_numbers = #tpu.dot_dimension_numbers<[1], [0], [0], [1], [0, 0, 1, 1], [], []>} : vector<8x64xbf16>, vector<64x1024xbf16>, vector<8x1024xf32> -> vector<8x1024xf32>
    %cst_3 = arith.constant dense<0.000000e+00> : vector<1024xf32>
    %8 = vector.multi_reduction <add>, %7, %cst_3 [0] : vector<8x1024xf32> to vector<1024xf32>
    %9 = vector.shape_cast %8 : vector<1024xf32> to vector<1x1024xf32>
    %10 = arith.mulf %7, %7 : vector<8x1024xf32>
    %cst_4 = arith.constant dense<0.000000e+00> : vector<1024xf32>
    %11 = vector.multi_reduction <add>, %10, %cst_4 [0] : vector<8x1024xf32> to vector<1024xf32>
    %12 = vector.shape_cast %11 : vector<1024xf32> to vector<1x1024xf32>
    %cst_5 = arith.constant 1.250000e-01 : f32
    %13 = vector.broadcast %cst_5 : f32 to vector<1x1024xf32>
    %14 = arith.mulf %9, %13 : vector<1x1024xf32>
    %cst_6 = arith.constant 1.250000e-01 : f32
    %15 = vector.broadcast %cst_6 : f32 to vector<1x1024xf32>
    %16 = arith.mulf %12, %15 : vector<1x1024xf32>
    %17 = arith.mulf %14, %14 : vector<1x1024xf32>
    %18 = arith.subf %16, %17 : vector<1x1024xf32>
    %c0_7 = arith.constant 0 : index
    %c0_8 = arith.constant 0 : index
    %19 = vector.load %arg3[%c0_7, %c0_8] : memref<1x1024xf32, #tpu.memory_space<vmem>>, vector<1x1024xf32>
    %cst_9 = arith.constant 9.99999974E-6 : f32
    %20 = vector.broadcast %cst_9 : f32 to vector<1x1024xf32>
    %21 = arith.addf %18, %20 : vector<1x1024xf32>
    %22 = math.rsqrt %21 : vector<1x1024xf32>
    %23 = arith.mulf %19, %22 : vector<1x1024xf32>
    %c0_10 = arith.constant 0 : index
    %c0_11 = arith.constant 0 : index
    %24 = vector.load %arg4[%c0_10, %c0_11] : memref<1x1024xf32, #tpu.memory_space<vmem>>, vector<1x1024xf32>
    %25 = arith.mulf %14, %23 : vector<1x1024xf32>
    %26 = arith.subf %24, %25 : vector<1x1024xf32>
    %27 = vector.broadcast %23 : vector<1x1024xf32> to vector<8x1024xf32>
    %28 = arith.mulf %7, %27 : vector<8x1024xf32>
    %29 = vector.broadcast %26 : vector<1x1024xf32> to vector<8x1024xf32>
    %30 = arith.addf %28, %29 : vector<8x1024xf32>
    %cst_12 = arith.constant 0.000000e+00 : f32
    %31 = vector.broadcast %cst_12 : f32 to vector<8x1024xf32>
    %32 = arith.maximumf %30, %31 : vector<8x1024xf32>
    %33 = arith.truncf %32 : vector<8x1024xf32> to vector<8x1024xbf16>
    %c0_i32_13 = arith.constant 0 : i32
    %34 = tpu.memref_slice %arg19[%c0_i32_13] : memref<2x!tpu.dma_semaphore, #tpu.memory_space<semaphore_mem>> -> memref<1x!tpu.dma_semaphore, #tpu.memory_space<semaphore_mem>>
    %35 = tpu.memref_squeeze %34 : memref<1x!tpu.dma_semaphore, #tpu.memory_space<semaphore_mem>> -> memref<!tpu.dma_semaphore, #tpu.memory_space<semaphore_mem>>
    tpu.wait_dma2 semaphore(%35 : memref<!tpu.dma_semaphore, #tpu.memory_space<semaphore_mem>>) src(%arg5 : memref<1024x512xbf16, #tpu.memory_space<any>>) dst(%arg17 : memref<1024x512xbf16, #tpu.memory_space<vmem>>)
    %c0_14 = arith.constant 0 : index
    %c0_15 = arith.constant 0 : index
    %36 = vector.load %arg17[%c0_14, %c0_15] : memref<1024x512xbf16, #tpu.memory_space<vmem>>, vector<1024x512xbf16>
    %cst_16 = arith.constant dense<0.000000e+00> : vector<8x512xf32>
    %37 = tpu.matmul %33, %36, %cst_16 {dimension_numbers = #tpu.dot_dimension_numbers<[1], [0], [0], [1], [0, 0, 1, 1], [], []>} : vector<8x1024xbf16>, vector<1024x512xbf16>, vector<8x512xf32> -> vector<8x512xf32>
    %cst_17 = arith.constant dense<0.000000e+00> : vector<512xf32>
    %38 = vector.multi_reduction <add>, %37, %cst_17 [0] : vector<8x512xf32> to vector<512xf32>
    %39 = vector.shape_cast %38 : vector<512xf32> to vector<1x512xf32>
    %40 = arith.mulf %37, %37 : vector<8x512xf32>
    %cst_18 = arith.constant dense<0.000000e+00> : vector<512xf32>
    %41 = vector.multi_reduction <add>, %40, %cst_18 [0] : vector<8x512xf32> to vector<512xf32>
    %42 = vector.shape_cast %41 : vector<512xf32> to vector<1x512xf32>
    %cst_19 = arith.constant 1.250000e-01 : f32
    %43 = vector.broadcast %cst_19 : f32 to vector<1x512xf32>
    %44 = arith.mulf %39, %43 : vector<1x512xf32>
    %cst_20 = arith.constant 1.250000e-01 : f32
    %45 = vector.broadcast %cst_20 : f32 to vector<1x512xf32>
    %46 = arith.mulf %42, %45 : vector<1x512xf32>
    %47 = arith.mulf %44, %44 : vector<1x512xf32>
    %48 = arith.subf %46, %47 : vector<1x512xf32>
    %c0_21 = arith.constant 0 : index
    %c0_22 = arith.constant 0 : index
    %49 = vector.load %arg6[%c0_21, %c0_22] : memref<1x512xf32, #tpu.memory_space<vmem>>, vector<1x512xf32>
    %cst_23 = arith.constant 9.99999974E-6 : f32
    %50 = vector.broadcast %cst_23 : f32 to vector<1x512xf32>
    %51 = arith.addf %48, %50 : vector<1x512xf32>
    %52 = math.rsqrt %51 : vector<1x512xf32>
    %53 = arith.mulf %49, %52 : vector<1x512xf32>
    %c0_24 = arith.constant 0 : index
    %c0_25 = arith.constant 0 : index
    %54 = vector.load %arg7[%c0_24, %c0_25] : memref<1x512xf32, #tpu.memory_space<vmem>>, vector<1x512xf32>
    %55 = arith.mulf %44, %53 : vector<1x512xf32>
    %56 = arith.subf %54, %55 : vector<1x512xf32>
    %57 = vector.broadcast %53 : vector<1x512xf32> to vector<8x512xf32>
    %58 = arith.mulf %37, %57 : vector<8x512xf32>
    %59 = vector.broadcast %56 : vector<1x512xf32> to vector<8x512xf32>
    %60 = arith.addf %58, %59 : vector<8x512xf32>
    %cst_26 = arith.constant 0.000000e+00 : f32
    %61 = vector.broadcast %cst_26 : f32 to vector<8x512xf32>
    %62 = arith.maximumf %60, %61 : vector<8x512xf32>
    %63 = arith.truncf %62 : vector<8x512xf32> to vector<8x512xbf16>
    %c1_i32_27 = arith.constant 1 : i32
    %64 = tpu.memref_slice %arg19[%c1_i32_27] : memref<2x!tpu.dma_semaphore, #tpu.memory_space<semaphore_mem>> -> memref<1x!tpu.dma_semaphore, #tpu.memory_space<semaphore_mem>>
    %65 = tpu.memref_squeeze %64 : memref<1x!tpu.dma_semaphore, #tpu.memory_space<semaphore_mem>> -> memref<!tpu.dma_semaphore, #tpu.memory_space<semaphore_mem>>
    tpu.wait_dma2 semaphore(%65 : memref<!tpu.dma_semaphore, #tpu.memory_space<semaphore_mem>>) src(%arg8 : memref<512x256xbf16, #tpu.memory_space<any>>) dst(%arg18 : memref<512x256xbf16, #tpu.memory_space<vmem>>)
    %c0_28 = arith.constant 0 : index
    %c0_29 = arith.constant 0 : index
    %66 = vector.load %arg18[%c0_28, %c0_29] : memref<512x256xbf16, #tpu.memory_space<vmem>>, vector<512x256xbf16>
    %cst_30 = arith.constant dense<0.000000e+00> : vector<8x256xf32>
    %67 = tpu.matmul %63, %66, %cst_30 {dimension_numbers = #tpu.dot_dimension_numbers<[1], [0], [0], [1], [0, 0, 1, 1], [], []>} : vector<8x512xbf16>, vector<512x256xbf16>, vector<8x256xf32> -> vector<8x256xf32>
    %cst_31 = arith.constant dense<0.000000e+00> : vector<256xf32>
    %68 = vector.multi_reduction <add>, %67, %cst_31 [0] : vector<8x256xf32> to vector<256xf32>
    %69 = vector.shape_cast %68 : vector<256xf32> to vector<1x256xf32>
    %70 = arith.mulf %67, %67 : vector<8x256xf32>
    %cst_32 = arith.constant dense<0.000000e+00> : vector<256xf32>
    %71 = vector.multi_reduction <add>, %70, %cst_32 [0] : vector<8x256xf32> to vector<256xf32>
    %72 = vector.shape_cast %71 : vector<256xf32> to vector<1x256xf32>
    %cst_33 = arith.constant 1.250000e-01 : f32
    %73 = vector.broadcast %cst_33 : f32 to vector<1x256xf32>
    %74 = arith.mulf %69, %73 : vector<1x256xf32>
    %cst_34 = arith.constant 1.250000e-01 : f32
    %75 = vector.broadcast %cst_34 : f32 to vector<1x256xf32>
    %76 = arith.mulf %72, %75 : vector<1x256xf32>
    %77 = arith.mulf %74, %74 : vector<1x256xf32>
    %78 = arith.subf %76, %77 : vector<1x256xf32>
    %c0_35 = arith.constant 0 : index
    %c0_36 = arith.constant 0 : index
    %79 = vector.load %arg9[%c0_35, %c0_36] : memref<1x256xf32, #tpu.memory_space<vmem>>, vector<1x256xf32>
    %cst_37 = arith.constant 9.99999974E-6 : f32
    %80 = vector.broadcast %cst_37 : f32 to vector<1x256xf32>
    %81 = arith.addf %78, %80 : vector<1x256xf32>
    %82 = math.rsqrt %81 : vector<1x256xf32>
    %83 = arith.mulf %79, %82 : vector<1x256xf32>
    %c0_38 = arith.constant 0 : index
    %c0_39 = arith.constant 0 : index
    %84 = vector.load %arg10[%c0_38, %c0_39] : memref<1x256xf32, #tpu.memory_space<vmem>>, vector<1x256xf32>
    %85 = arith.mulf %74, %83 : vector<1x256xf32>
    %86 = arith.subf %84, %85 : vector<1x256xf32>
    %87 = vector.broadcast %83 : vector<1x256xf32> to vector<8x256xf32>
    %88 = arith.mulf %67, %87 : vector<8x256xf32>
    %89 = vector.broadcast %86 : vector<1x256xf32> to vector<8x256xf32>
    %90 = arith.addf %88, %89 : vector<8x256xf32>
    %cst_40 = arith.constant 0.000000e+00 : f32
    %91 = vector.broadcast %cst_40 : f32 to vector<8x256xf32>
    %92 = arith.maximumf %90, %91 : vector<8x256xf32>
    %93 = arith.truncf %92 : vector<8x256xf32> to vector<8x256xbf16>
    %c0_41 = arith.constant 0 : index
    %c0_42 = arith.constant 0 : index
    %94 = vector.load %arg11[%c0_41, %c0_42] : memref<256x128xbf16, #tpu.memory_space<vmem>>, vector<256x128xbf16>
    %cst_43 = arith.constant dense<0.000000e+00> : vector<8x128xf32>
    %95 = tpu.matmul %93, %94, %cst_43 {dimension_numbers = #tpu.dot_dimension_numbers<[1], [0], [0], [1], [0, 0, 1, 1], [], []>} : vector<8x256xbf16>, vector<256x128xbf16>, vector<8x128xf32> -> vector<8x128xf32>
    %cst_44 = arith.constant dense<0.000000e+00> : vector<128xf32>
    %96 = vector.multi_reduction <add>, %95, %cst_44 [0] : vector<8x128xf32> to vector<128xf32>
    %97 = vector.shape_cast %96 : vector<128xf32> to vector<1x128xf32>
    %98 = arith.mulf %95, %95 : vector<8x128xf32>
    %cst_45 = arith.constant dense<0.000000e+00> : vector<128xf32>
    %99 = vector.multi_reduction <add>, %98, %cst_45 [0] : vector<8x128xf32> to vector<128xf32>
    %100 = vector.shape_cast %99 : vector<128xf32> to vector<1x128xf32>
    %cst_46 = arith.constant 1.250000e-01 : f32
    %101 = vector.broadcast %cst_46 : f32 to vector<1x128xf32>
    %102 = arith.mulf %97, %101 : vector<1x128xf32>
    %cst_47 = arith.constant 1.250000e-01 : f32
    %103 = vector.broadcast %cst_47 : f32 to vector<1x128xf32>
    %104 = arith.mulf %100, %103 : vector<1x128xf32>
    %105 = arith.mulf %102, %102 : vector<1x128xf32>
    %106 = arith.subf %104, %105 : vector<1x128xf32>
    %c0_48 = arith.constant 0 : index
    %c0_49 = arith.constant 0 : index
    %107 = vector.load %arg12[%c0_48, %c0_49] : memref<1x128xf32, #tpu.memory_space<vmem>>, vector<1x128xf32>
    %cst_50 = arith.constant 9.99999974E-6 : f32
    %108 = vector.broadcast %cst_50 : f32 to vector<1x128xf32>
    %109 = arith.addf %106, %108 : vector<1x128xf32>
    %110 = math.rsqrt %109 : vector<1x128xf32>
    %111 = arith.mulf %107, %110 : vector<1x128xf32>
    %c0_51 = arith.constant 0 : index
    %c0_52 = arith.constant 0 : index
    %112 = vector.load %arg13[%c0_51, %c0_52] : memref<1x128xf32, #tpu.memory_space<vmem>>, vector<1x128xf32>
    %113 = arith.mulf %102, %111 : vector<1x128xf32>
    %114 = arith.subf %112, %113 : vector<1x128xf32>
    %115 = vector.broadcast %111 : vector<1x128xf32> to vector<8x128xf32>
    %116 = arith.mulf %95, %115 : vector<8x128xf32>
    %117 = vector.broadcast %114 : vector<1x128xf32> to vector<8x128xf32>
    %118 = arith.addf %116, %117 : vector<8x128xf32>
    %cst_53 = arith.constant 0.000000e+00 : f32
    %119 = vector.broadcast %cst_53 : f32 to vector<8x128xf32>
    %120 = arith.maximumf %118, %119 : vector<8x128xf32>
    %121 = arith.truncf %120 : vector<8x128xf32> to vector<8x128xbf16>
    %c0_54 = arith.constant 0 : index
    %c0_55 = arith.constant 0 : index
    %122 = vector.load %arg14[%c0_54, %c0_55] : memref<128x128xbf16, #tpu.memory_space<vmem>>, vector<128x128xbf16>
    %cst_56 = arith.constant dense<0.000000e+00> : vector<8x128xf32>
    %123 = tpu.matmul %121, %122, %cst_56 {dimension_numbers = #tpu.dot_dimension_numbers<[1], [0], [0], [1], [0, 0, 1, 1], [], []>} : vector<8x128xbf16>, vector<128x128xbf16>, vector<8x128xf32> -> vector<8x128xf32>
    %c0_57 = arith.constant 0 : index
    %c0_58 = arith.constant 0 : index
    %124 = vector.load %arg15[%c0_57, %c0_58] : memref<1x128xf32, #tpu.memory_space<vmem>>, vector<1x128xf32>
    %125 = vector.broadcast %124 : vector<1x128xf32> to vector<8x128xf32>
    %126 = arith.addf %123, %125 : vector<8x128xf32>
    %c0_59 = arith.constant 0 : index
    %c0_60 = arith.constant 0 : index
    %127 = vector.load %arg16[%c0_59, %c0_60] : memref<8x128xf32, #tpu.memory_space<vmem>>, vector<8x128xf32>
    tpu.vector_store %arg16[%c0_59, %c0_60], %126 {strides = array<i32>} : memref<8x128xf32, #tpu.memory_space<vmem>>, vector<8x128xf32>,
    return
  }
  func.func @transform_0(%arg0: i32) -> (i32, i32) {
    %c0_i32 = arith.constant 0 : i32
    %c0_i32_0 = arith.constant 0 : i32
    %c0_i32_1 = arith.constant 0 : i32
    return %c0_i32, %c0_i32_0 : i32, i32
  }
  func.func @transform_1(%arg0: i32) -> (i32, i32) {
    %c0_i32 = arith.constant 0 : i32
    %c0_i32_0 = arith.constant 0 : i32
    %c0_i32_1 = arith.constant 0 : i32
    return %c0_i32, %c0_i32_0 : i32, i32
  }
  func.func @transform_2(%arg0: i32) -> (i32, i32) {
    %c0_i32 = arith.constant 0 : i32
    %c0_i32_0 = arith.constant 0 : i32
    %c0_i32_1 = arith.constant 0 : i32
    return %c0_i32, %c0_i32_0 : i32, i32
  }
  func.func @transform_3(%arg0: i32) -> (i32, i32) {
    %c0_i32 = arith.constant 0 : i32
    %c0_i32_0 = arith.constant 0 : i32
    %c0_i32_1 = arith.constant 0 : i32
    return %c0_i32, %c0_i32_0 : i32, i32
  }
  func.func @transform_5(%arg0: i32) -> (i32, i32) {
    %c0_i32 = arith.constant 0 : i32
    %c0_i32_0 = arith.constant 0 : i32
    %c0_i32_1 = arith.constant 0 : i32
    return %c0_i32, %c0_i32_0 : i32, i32
  }
  func.func @transform_6(%arg0: i32) -> (i32, i32) {
    %c0_i32 = arith.constant 0 : i32
    %c0_i32_0 = arith.constant 0 : i32
    %c0_i32_1 = arith.constant 0 : i32
    return %c0_i32, %c0_i32_0 : i32, i32
  }
  func.func @transform_8(%arg0: i32) -> (i32, i32) {
    %c0_i32 = arith.constant 0 : i32
    %c0_i32_0 = arith.constant 0 : i32
    %c0_i32_1 = arith.constant 0 : i32
    return %c0_i32, %c0_i32_0 : i32, i32
  }
  func.func @transform_9(%arg0: i32) -> (i32, i32) {
    %c0_i32 = arith.constant 0 : i32
    %c0_i32_0 = arith.constant 0 : i32
    %c0_i32_1 = arith.constant 0 : i32
    return %c0_i32, %c0_i32_0 : i32, i32
  }
  func.func @transform_10(%arg0: i32) -> (i32, i32) {
    %c0_i32 = arith.constant 0 : i32
    %c0_i32_0 = arith.constant 0 : i32
    %c0_i32_1 = arith.constant 0 : i32
    return %c0_i32, %c0_i32_0 : i32, i32
  }
  func.func @transform_11(%arg0: i32) -> (i32, i32) {
    %c0_i32 = arith.constant 0 : i32
    %c0_i32_0 = arith.constant 0 : i32
    %c0_i32_1 = arith.constant 0 : i32
    return %c0_i32, %c0_i32_0 : i32, i32
  }
  func.func @transform_12(%arg0: i32) -> (i32, i32) {
    %c0_i32 = arith.constant 0 : i32
    %c0_i32_0 = arith.constant 0 : i32
    %c0_i32_1 = arith.constant 0 : i32
    return %c0_i32, %c0_i32_0 : i32, i32
  }
  func.func @transform_13(%arg0: i32) -> (i32, i32) {
    %c0_i32 = arith.constant 0 : i32
    %c0_i32_0 = arith.constant 0 : i32
    %c0_i32_1 = arith.constant 0 : i32
    return %c0_i32, %c0_i32_0 : i32, i32
  }
  func.func @transform_14(%arg0: i32) -> (i32, i32) {
    %c0_i32 = arith.constant 0 : i32
    %c0_i32_0 = arith.constant 0 : i32
    %c0_i32_1 = arith.constant 0 : i32
    return %c0_i32, %c0_i32_0 : i32, i32
  }
  func.func @transform_15(%arg0: i32) -> (i32, i32) {
    %c0_i32 = arith.constant 0 : i32
    %c0_i32_0 = arith.constant 0 : i32
    %c0_i32_1 = arith.constant 0 : i32
    return %c0_i32, %c0_i32_0 : i32, i32
  }
}

</mosaic_0001>

<bundles_post_ra>
// kernel: baseline_forward.1
= control target key start
LH: loop header
LB: loop body
LE: loop exit
PB: predicated region body
PF: predicated region fallthrough
CT: control target
= control target key end

     0   :  { %20 = vsyncpa [#allocation6], 0  ;;  %s3034_s0 = inlined_call_operand.vmem [shape: f32[8,64], index: 0, kind: input, shape index: {}]   ;;  %s3035_s1 = inlined_call_operand.hbm [shape: bf16[64,1024], index: 1, kind: input, shape index: {}]   ;;  %s3036_s2 = inlined_call_operand.vmem [shape: f32[1,1024], index: 2, kind: input, shape index: {}]   ;;  %s3037_s3 = inlined_call_operand.vmem [shape: f32[1,1024], index: 3, kind: input, shape index: {}]   ;;  %s3038_s4 = inlined_call_operand.hbm [shape: bf16[1024,512], index: 4, kind: input, shape index: {}]   ;;  %s3039_s5 = inlined_call_operand.vmem [shape: f32[1,512], index: 5, kind: input, shape index: {}]   ;;  %s3040_s6 = inlined_call_operand.vmem [shape: f32[1,512], index: 6, kind: input, shape index: {}]   ;;  %s3041_s7 = inlined_call_operand.hbm [shape: bf16[512,256], index: 7, kind: input, shape index: {}]   ;;  %s3042_s8 = inlined_call_operand.vmem [shape: f32[1,256], index: 8, kind: input, shape index: {}]   ;;  %s3043_s9 = inlined_call_operand.vmem [shape: f32[1,256], index: 9, kind: input, shape index: {}]   ;;  %s3044_s10 = inlined_call_operand.hbm [shape: bf16[256,128], index: 10, kind: input, shape index: {}]   ;;  %s3045_s11 = inlined_call_operand.vmem [shape: f32[1,128], index: 11, kind: input, shape index: {}]   ;;  %s3046_s12 = inlined_call_operand.vmem [shape: f32[1,128], index: 12, kind: input, shape index: {}]   ;;  %s3047_s13 = inlined_call_operand.vmem [shape: bf16[128,128], index: 13, kind: input, shape index: {}]   ;;  %s3048_s14 = inlined_call_operand.vmem [shape: f32[1,128], index: 14, kind: input, shape index: {}]   ;;  %s3049_s15 = inlined_call_operand.hbm [shape: f32[8,128], index: 15, kind: output, shape index: {}]  }
   0x1   :  { %21 = vsyncpa [#allocation9], 0 }
   0x2   :  { %22 = vsyncpa [#allocation7], 0  ;;  %s2595_s18 = smov [#allocation5]   ;;  %s2519_s22 = scalar_lea.hbm %s3035_s1, 4096 }
   0x3   :  { %s30_s19 = sshll.u32 %s2595_s18, 4  ;;  %p2520_p0 = scmp.ne.s32.totalorder %s3035_s1, %s2519_s22  ;;  %s31_s19 = int_to_ptr.vmem [resolvable:$true] %s30_s19 }
   0x4   :  { %p2523_p1 = scmp.lt.u32.totalorder %s2519_s22, %s3035_s1 }
   0x6   :  { %p2525_p2 = pnand %p2523_p1, %p2520_p0 }
   0x8   :  { %2528 = shalt.err (!%p2525_p2)
}
   0x9   :  { %s2529_s27 = scalar_lea.vmem %s31_s19, 4096  ;;  %p2534_p4 = scmp.lt.s32.totalorder %s31_s19, %s31_s19 }
   0xa   :  { %p2530_p3 = scmp.ne.s32.totalorder %s31_s19, %s2529_s27  ;;  %p2535_p5 = scmp.lt.s32.totalorder %s2529_s27, %s2529_s27 }
   0xc   :  { %p2536_p6 = por %p2535_p5, %p2534_p4 }
   0xe   :  { %p2537_p7 = pnand %p2536_p6, %p2530_p3 }
  0x10   :  { %2540 = shalt.err (!%p2537_p7)
}
  0x11   :  { %s2596_s28 = smov 512   ;;  %s2597_s29 = smov 32  }
  0x12   :  { %36 = dma.hbm_to_vmem [thread:$0]  %s3035_s1, 4096, %s31_s19, [#allocation6], %s2596_s28, %s2596_s28, %s2597_s29  }
  0x13   :  { %s2598_s17 = smov [#allocation8]   ;;  %s2541_s22 = scalar_lea.hbm %s3044_s10, 2048 }
  0x14   :  { %s54_s18 = sshll.u32 %s2598_s17, 4  ;;  %p2542_p8 = scmp.ne.s32.totalorder %s3044_s10, %s2541_s22  ;;  %s55_s18 = int_to_ptr.vmem [resolvable:$true] %s54_s18 }
  0x15   :  { %p2545_p9 = scmp.lt.u32.totalorder %s2541_s22, %s3044_s10 }
  0x17   :  { %p2547_p10 = pnand %p2545_p9, %p2542_p8 }
  0x19   :  { %2550 = shalt.err (!%p2547_p10)
}
  0x1a   :  { %s2551_s27 = scalar_lea.vmem %s55_s18, 2048  ;;  %p2556_p12 = scmp.lt.s32.totalorder %s55_s18, %s55_s18 }
  0x1b   :  { %p2552_p11 = scmp.ne.s32.totalorder %s55_s18, %s2551_s27  ;;  %p2557_p13 = scmp.lt.s32.totalorder %s2551_s27, %s2551_s27 }
  0x1d   :  { %p2558_p0 = por %p2557_p13, %p2556_p12 }
  0x1f   :  { %p2559_p1 = pnand %p2558_p0, %p2552_p11 }
  0x21   :  { %2562 = shalt.err (!%p2559_p1)
}
  0x22   :  { %s2599_s1 = smov 64   ;;  %s2600_s19 = smov 4  }
  0x23   :  { %60 = dma.hbm_to_vmem [thread:$0]  %s3044_s10, 2048, %s55_s18, [#allocation9], %s2599_s1, %s2599_s1, %s2600_s19  }
  0x24   :  { %2585 = dma.done.wait [#allocation6], 4096  }
  0x25   :  { %2586 = vsyncadd [#allocation6], 4294963200 }
  0x26   :  { %2587 = dma.done.wait [#allocation9], 2048  }
  0x27   :  { %2588 = vsyncadd [#allocation9], 4294965248  ;;  %s80_s16 = sld [smem:[#allocation0]]   ;;  %92 = sst [smem:[#allocation12]] %s2596_s28  ;;  %v2601_v0 = vmov 0   ;;  %vm340_vm0 = vcmask 523264  }
  0x28   :  { %376 = vmatprep.mubr.bf16.mxu1 %v2601_v0  ;;  %94 = sst [smem:[#allocation12 + $0x1]] %s2596_s28  ;;  %s2602_s17 = smov [#allocation2]  }
  0x29   :  { %s88_s20 = sshll.u32 %s2602_s17, 4  ;;  %96 = sst [smem:[#allocation12 + $0x2]] %s2600_s19  ;;  %s89_s20 = int_to_ptr.vmem [resolvable:$true] %s88_s20 }
  0x2a   :  { %98 = sst [smem:[#allocation12 + $0x3]] %s2599_s1  ;;  %s2603_s18 = smov 128  }
  0x2b   :  { %106 = sst [smem:[#allocation12 + $0x7]] %s2599_s1  ;;  %s2604_s22 = smov 2  }
  0x2c   :  { %108 = sst [smem:[#allocation12 + $0x8]] %s2600_s19  ;;  %s2605_s23 = smov 256  }
  0x2d   :  { %s2299_s10 = sshll.u32 %s80_s16, 26  ;;  %100 = sst [smem:[#allocation12 + $0x4]] %s2603_s18 }
  0x2e   :  { %s2300_s21 = sadd.s32 134217728, %s2299_s10  ;;  %102 = sst [smem:[#allocation12 + $0x5]] %s2604_s22 }
  0x2f   :  { %104 = sst [smem:[#allocation12 + $0x6]] %s2605_s23  ;;  %s2606_s28 = smov [#allocation4]  }
  0x30   :  { %s2607_s24 = smov [#allocation11]   ;;  %s2608_s27 = smov [#allocation3]  }
  0x31   :  { %110 = dma.general %s3038_s4, 32768, %s89_s20, %s2606_s28, %s2607_s24, [#allocation12], %s2300_s21, 0  }
  0x32   :  { %127 = sst [smem:[#allocation14]] %s2605_s23  ;;  %s123_s29 = sshll.u32 %s2608_s27, 4  ;;  %s124_s29 = int_to_ptr.vmem [resolvable:$true] %s123_s29 }
  0x33   :  { %129 = sst [smem:[#allocation14 + $0x1]] %s2605_s23  ;;  %s2609_s30 = smov [#allocation4 + $0x1]  }
  0x34   :  { %131 = sst [smem:[#allocation14 + $0x2]] %s2604_s22  ;;  %s2610_s16 = smov [#allocation13]  }
  0x35   :  { %133 = sst [smem:[#allocation14 + $0x3]] %s2599_s1 }
  0x36   :  { %135 = sst [smem:[#allocation14 + $0x4]] %s2603_s18 }
  0x37   :  { %137 = sst [smem:[#allocation14 + $0x5]] %s2604_s22 }
  0x38   :  { %139 = sst [smem:[#allocation14 + $0x6]] %s2603_s18 }
  0x39   :  { %141 = sst [smem:[#allocation14 + $0x7]] %s2599_s1 }
  0x3a   :  { %143 = sst [smem:[#allocation14 + $0x8]] %s2600_s19 }
  0x3b   :  { %145 = dma.general %s3041_s7, 8192, %s124_s29, %s2609_s30, %s2610_s16, [#allocation14], %s2300_s21, 0  }
  0x3c   :  { %v148_v1 = vld [vmem:[#allocation5] sm:$0xff]  ;;  %v149_v16 = vld [vmem:[#allocation5 + $0x8] sm:$0xff]  ;;  %v150_v34 = vld [vmem:[#allocation5 + $0x10] sm:$0xff] }
  0x3d   :  { %v152_v2 = vld [vmem:[#allocation5 + $0x20] sm:$0xff]  ;;  %v153_v17 = vld [vmem:[#allocation5 + $0x28] sm:$0xff]  ;;  %v154_v35 = vld [vmem:[#allocation5 + $0x30] sm:$0xff] }
  0x3e   :  { %v156_v3 = vld [vmem:[#allocation5 + $0x40] sm:$0xff]  ;;  %v2304_v4 = vcombine.high %v148_v1, %v152_v2  ;;  %v2303_v5 = vcombine.low %v148_v1, %v152_v2  ;;  %v2306_v20 = vcombine.high %v149_v16, %v153_v17  ;;  %v157_v21 = vld [vmem:[#allocation5 + $0x48] sm:$0xff]  ;;  %v2305_v24 = vcombine.low %v149_v16, %v153_v17  ;;  %v158_v38 = vld [vmem:[#allocation5 + $0x50] sm:$0xff] }
  0x3f   :  { %v160_v6 = vld [vmem:[#allocation5 + $0x60] sm:$0xff]  ;;  %v161_v22 = vld [vmem:[#allocation5 + $0x68] sm:$0xff]  ;;  %v2308_v37 = vcombine.high %v150_v34, %v154_v35  ;;  %v162_v39 = vld [vmem:[#allocation5 + $0x70] sm:$0xff]  ;;  %v2307_v40 = vcombine.low %v150_v34, %v154_v35 }
  0x40   :  { %v2312_v7 = vcombine.high %v156_v3, %v160_v6  ;;  %v164_v8 = vld [vmem:[#allocation5 + $0x80] sm:$0xff]  ;;  %344 = vmatprep.subr.bf16.mxu1 %v2304_v4  ;;  %v2311_v10 = vcombine.low %v156_v3, %v160_v6  ;;  %v2314_v25 = vcombine.high %v157_v21, %v161_v22  ;;  %v165_v26 = vld [vmem:[#allocation5 + $0x88] sm:$0xff]  ;;  %v2313_v28 = vcombine.low %v157_v21, %v161_v22  ;;  %v166_v42 = vld [vmem:[#allocation5 + $0x90] sm:$0xff] }
  0x41   :  { %v168_v9 = vld [vmem:[#allocation5 + $0xa0] sm:$0xff]  ;;  %345 = vmatpush1.bf16.msra.mxu1 %v2303_v5  ;;  %v169_v27 = vld [vmem:[#allocation5 + $0xa8] sm:$0xff]  ;;  %v2316_v41 = vcombine.high %v158_v38, %v162_v39  ;;  %v170_v43 = vld [vmem:[#allocation5 + $0xb0] sm:$0xff]  ;;  %v2315_v44 = vcombine.low %v158_v38, %v162_v39 }
  0x42   :  { %346 = vmatprep.subr.bf16.mxu1 %v2312_v7  ;;  %v2320_v11 = vcombine.high %v164_v8, %v168_v9  ;;  %v172_v12 = vld [vmem:[#allocation5 + $0xc0] sm:$0xff]  ;;  %v2319_v14 = vcombine.low %v164_v8, %v168_v9  ;;  %v2322_v29 = vcombine.high %v165_v26, %v169_v27  ;;  %v173_v30 = vld [vmem:[#allocation5 + $0xc8] sm:$0xff]  ;;  %v2321_v32 = vcombine.low %v165_v26, %v169_v27  ;;  %v174_v46 = vld [vmem:[#allocation5 + $0xd0] sm:$0xff] }
  0x43   :  { %v176_v13 = vld [vmem:[#allocation5 + $0xe0] sm:$0xff]  ;;  %v177_v31 = vld [vmem:[#allocation5 + $0xe8] sm:$0xff]  ;;  %v2324_v45 = vcombine.high %v166_v42, %v170_v43  ;;  %v178_v47 = vld [vmem:[#allocation5 + $0xf0] sm:$0xff]  ;;  %v2323_v48 = vcombine.low %v166_v42, %v170_v43 }
  0x44   :  { %v2328_v15 = vcombine.high %v172_v12, %v176_v13  ;;  %v2327_v18 = vcombine.low %v172_v12, %v176_v13  ;;  %v146_v19 = vld [vmem:[%s3034_s0] sm:$0xff]  ;;  %v2330_v33 = vcombine.high %v173_v30, %v177_v31  ;;  %v2329_v36 = vcombine.low %v173_v30, %v177_v31  ;;  %v151_v50 = vld [vmem:[#allocation5 + $0x18] sm:$0xff] }
  0x45   :  { %347 = vmatpush1.bf16.msra.mxu1 %v2311_v10  ;;  %v2739_v23 = vpack.c.bf16 %v146_v19, %v146_v19  ;;  %v2332_v49 = vcombine.high %v174_v46, %v178_v47  ;;  %v155_v51 = vld [vmem:[#allocation5 + $0x38] sm:$0xff]  ;;  %v2331_v52 = vcombine.low %v174_v46, %v178_v47 }
  0x46   :  { %348 = vmatprep.subr.bf16.mxu1 %v2320_v11  ;;  %v2310_v53 = vcombine.high %v151_v50, %v155_v51  ;;  %v159_v54 = vld [vmem:[#allocation5 + $0x58] sm:$0xff]  ;;  %v2309_v56 = vcombine.low %v151_v50, %v155_v51 }
  0x47   :  { %v163_v55 = vld [vmem:[#allocation5 + $0x78] sm:$0xff] }
  0x48   :  { %v2318_v57 = vcombine.high %v159_v54, %v163_v55  ;;  %v167_v58 = vld [vmem:[#allocation5 + $0x98] sm:$0xff]  ;;  %v2317_v60 = vcombine.low %v159_v54, %v163_v55 }
  0x49   :  { %349 = vmatpush1.bf16.msra.mxu1 %v2319_v14  ;;  %v171_v59 = vld [vmem:[#allocation5 + $0xb8] sm:$0xff] }
  0x4a   :  { %350 = vmatprep.subr.bf16.mxu1 %v2328_v15  ;;  %v2326_v61 = vcombine.high %v167_v58, %v171_v59  ;;  %v175_v62 = vld [vmem:[#allocation5 + $0xd8] sm:$0xff]  ;;  %v2325_v1 = vcombine.low %v167_v58, %v171_v59 }
  0x4b   :  { %v179_v63 = vld [vmem:[#allocation5 + $0xf8] sm:$0xff] }
  0x4c   :  { %v2334_v2 = vcombine.high %v175_v62, %v179_v63  ;;  %v2333_v3 = vcombine.low %v175_v62, %v179_v63 }
  0x4d   :  { %351 = vmatpush1.bf16.msra.mxu1 %v2327_v18 }
  0x4e   :  { %385 = vmatprep.subr.bf16.mxu1 %v2306_v20 }
  0x50   :  { %2335 = vmatmul.mubr.msk.bf16.vlgmr.msra.gmra.mrb[0].mxu1 %vm340_vm0, %v2739_v23 }
  0x51   :  { %386 = vmatpush1.bf16.msra.mxu1 %v2305_v24  ;;  %417 = vmatprep.mubr.bf16.mxu1 %v2601_v0 }
  0x52   :  { %387 = vmatprep.subr.bf16.mxu1 %v2314_v25 }
  0x55   :  { %388 = vmatpush1.bf16.msra.mxu1 %v2313_v28 }
  0x56   :  { %389 = vmatprep.subr.bf16.mxu1 %v2322_v29 }
  0x59   :  { %390 = vmatpush1.bf16.msra.mxu1 %v2321_v32 }
  0x5a   :  { %391 = vmatprep.subr.bf16.mxu1 %v2330_v33 }
  0x5d   :  { %392 = vmatpush1.bf16.msra.mxu1 %v2329_v36 }
  0x5e   :  { %426 = vmatprep.subr.bf16.mxu1 %v2308_v37 }
  0x60   :  { %2336 = vmatmul.mubr.msk.bf16.vlgmr.msra.gmra.mrb[4].mxu1 %vm340_vm0, %v2739_v23 }
  0x61   :  { %427 = vmatpush1.bf16.msra.mxu1 %v2307_v40  ;;  %458 = vmatprep.mubr.bf16.mxu1 %v2601_v0 }
  0x62   :  { %428 = vmatprep.subr.bf16.mxu1 %v2316_v41 }
  0x65   :  { %429 = vmatpush1.bf16.msra.mxu1 %v2315_v44 }
  0x66   :  { %430 = vmatprep.subr.bf16.mxu1 %v2324_v45 }
  0x69   :  { %431 = vmatpush1.bf16.msra.mxu1 %v2323_v48 }
  0x6a   :  { %432 = vmatprep.subr.bf16.mxu1 %v2332_v49 }
  0x6d   :  { %433 = vmatpush1.bf16.msra.mxu1 %v2331_v52 }
  0x6e   :  { %467 = vmatprep.subr.bf16.mxu1 %v2310_v53 }
  0x70   :  { %2337 = vmatmul.mubr.msk.bf16.vlgmr.msra.gmra.mrb[8].mxu1 %vm340_vm0, %v2739_v23 }
  0x71   :  { %468 = vmatpush1.bf16.msra.mxu1 %v2309_v56  ;;  %499 = vmatprep.mubr.bf16.mxu1 %v2601_v0 }
  0x72   :  { %469 = vmatprep.subr.bf16.mxu1 %v2318_v57 }
  0x75   :  { %470 = vmatpush1.bf16.msra.mxu1 %v2317_v60 }
  0x76   :  { %471 = vmatprep.subr.bf16.mxu1 %v2326_v61 }
  0x79   :  { %472 = vmatpush1.bf16.msra.mxu1 %v2325_v1 }
  0x7a   :  { %473 = vmatprep.subr.bf16.mxu1 %v2334_v2 }
  0x7d   :  { %474 = vmatpush1.bf16.msra.mxu1 %v2333_v3 }
  0x80   :  { %2338 = vmatmul.mubr.msk.bf16.vlgmr.msra.gmra.mrb[12].mxu1 %vm340_vm0, %v2739_v23 }
 0x123   :  { %v2752_v4 = vpop.f32.mrb[0].mxu1 }
 0x124   :  { %v508_v5 = vrot.slane %v2752_v4, 4  ;;  %v556_v0 = vmul.f32 %v2752_v4, %v2752_v4  ;;  %v2757_v6 = vpop.f32.mrb[1].mxu1 }
 0x125   :  { %v514_v7 = vrot.slane %v2757_v6, 4  ;;  %v557_v8 = vmul.f32 %v2757_v6, %v2757_v6  ;;  %v382_v9 = vpop.f32.mrb[2].mxu1 }
 0x126   :  { %v509_v10 = vadd.f32 %v508_v5, %v2752_v4  ;;  %v564_v11 = vrot.slane %v556_v0, 4  ;;  %v383_v12 = vpop.f32.mrb[3].mxu1 }
 0x127   :  { %v515_v13 = vadd.f32 %v514_v7, %v2757_v6  ;;  %v570_v14 = vrot.slane %v557_v8, 4 }
 0x128   :  { %v510_v15 = vrot.slane %v509_v10, 2  ;;  %v565_v16 = vadd.f32 %v564_v11, %v556_v0 }
 0x129   :  { %v516_v17 = vrot.slane %v515_v13, 2  ;;  %v571_v18 = vadd.f32 %v570_v14, %v557_v8 }
 0x12a   :  { %v511_v19 = vadd.f32 %v510_v15, %v509_v10  ;;  %v566_v20 = vrot.slane %v565_v16, 2 }
 0x12b   :  { %v517_v21 = vadd.f32 %v516_v17, %v515_v13  ;;  %v572_v22 = vrot.slane %v571_v18, 2 }
 0x12c   :  { %v512_v23 = vrot.slane %v511_v19, 1  ;;  %v567_v24 = vadd.f32 %v566_v20, %v565_v16 }
 0x12d   :  { %v518_v25 = vrot.slane %v517_v21, 1  ;;  %v573_v26 = vadd.f32 %v572_v22, %v571_v18 }
 0x12e   :  { %v513_v27 = vadd.f32 %v512_v23, %v511_v19  ;;  %v568_v28 = vrot.slane %v567_v24, 1 }
 0x12f   :  { %v519_v29 = vadd.f32 %v518_v25, %v517_v21  ;;  %v574_v30 = vrot.slane %v573_v26, 1 }
 0x130   :  { %v569_v31 = vadd.f32 %v568_v28, %v567_v24  ;;  %v2764_v32 = vmul.f32 0.125, %v513_v27 }
 0x131   :  { %v575_v33 = vadd.f32 %v574_v30, %v573_v26  ;;  %v2766_v34 = vmul.f32 0.125, %v519_v29 }
 0x132   :  { %v620_v35 = vmul.f32 0.125, %v569_v31  ;;  %v628_v36 = vmul.f32 %v2764_v32, %v2764_v32 }
 0x133   :  { %v621_v37 = vmul.f32 0.125, %v575_v33  ;;  %v629_v38 = vmul.f32 %v2766_v34, %v2766_v34  ;;  %v2772_v39 = vpop.f32.mrb[4].mxu1 }
 0x134   :  { %v636_v40 = vsub.f32 %v620_v35, %v628_v36  ;;  %v520_v41 = vrot.slane %v2772_v39, 4  ;;  %v558_v42 = vmul.f32 %v2772_v39, %v2772_v39  ;;  %v2777_v43 = vpop.f32.mrb[5].mxu1 }
 0x135   :  { %v637_v44 = vsub.f32 %v621_v37, %v629_v38  ;;  %v526_v45 = vrot.slane %v2777_v43, 4  ;;  %v559_v46 = vmul.f32 %v2777_v43, %v2777_v43  ;;  %v423_v47 = vpop.f32.mrb[6].mxu1  ;;  %v2611_v38 = vmov 1966171168  }
 0x136   :  { %v645_v48 = vadd.f32 1e-05, %v636_v40  ;;  %v521_v49 = vadd.f32 %v520_v41, %v2772_v39  ;;  %v576_v50 = vrot.slane %v558_v42, 4  ;;  %v424_v51 = vpop.f32.mrb[7].mxu1  ;;  %v674_v40 = vunpack.c.l.s4 %v2611_v38 }
 0x137   :  { %v646_v52 = vadd.f32 1e-05, %v637_v44  ;;  %v527_v53 = vadd.f32 %v526_v45, %v2777_v43  ;;  %v582_v54 = vrot.slane %v559_v46, 4  ;;  %v676_v44 = vlaneseq }
 0x138   :  { %2465 = vrsqrt.f32 %v645_v48  ;;  %v522_v55 = vrot.slane %v521_v49, 2  ;;  %v577_v56 = vadd.f32 %v576_v50, %v558_v42 }
 0x139   :  { %2467 = vrsqrt.f32 %v646_v52  ;;  %v528_v57 = vrot.slane %v527_v53, 2  ;;  %v583_v58 = vadd.f32 %v582_v54, %v559_v46  ;;  %v2807_v54 = vshrl.u32 %v676_v44, 7 }
 0x13a   :  { %v523_v59 = vadd.f32 %v522_v55, %v521_v49  ;;  %v578_v60 = vrot.slane %v577_v56, 2 }
 0x13b   :  { %v529_v61 = vadd.f32 %v528_v57, %v527_v53  ;;  %v584_v62 = vrot.slane %v583_v58, 2  ;;  %v675_v53 = vunpack.c.0.s8 %v674_v40 }
 0x13c   :  { %v524_v63 = vrot.slane %v523_v59, 1  ;;  %v579_v1 = vadd.f32 %v578_v60, %v577_v56 }
 0x13d   :  { %v530_v2 = vrot.slane %v529_v61, 1  ;;  %v585_v3 = vadd.f32 %v584_v62, %v583_v58 }
 0x13e   :  { %v525_v5 = vadd.f32 %v524_v63, %v523_v59  ;;  %v580_v0 = vrot.slane %v579_v1, 1  ;;  %v2812_v63 = vsub.s32 %v675_v53, %v2807_v54 }
 0x13f   :  { %v531_v7 = vadd.f32 %v530_v2, %v529_v61  ;;  %v586_v8 = vrot.slane %v585_v3, 1 }
 0x140   :  { %v581_v9 = vadd.f32 %v580_v0, %v579_v1  ;;  %v2784_v10 = vmul.f32 0.125, %v525_v5 }
 0x141   :  { %v587_v11 = vadd.f32 %v586_v8, %v585_v3  ;;  %v2786_v12 = vmul.f32 0.125, %v531_v7 }
 0x142   :  { %v2788_v13 = vpop.eup %2465  ;;  %v622_v14 = vmul.f32 0.125, %v581_v9  ;;  %v630_v15 = vmul.f32 %v2784_v10, %v2784_v10 }
 0x143   :  { %v2468_v16 = vpop.eup %2467  ;;  %v623_v17 = vmul.f32 0.125, %v587_v11  ;;  %v631_v18 = vmul.f32 %v2786_v12, %v2786_v12  ;;  %v2794_v19 = vpop.f32.mrb[8].mxu1 }
 0x144   :  { %v669_v20 = vcombine.low %v2788_v13, %v2468_v16  ;;  %v638_v21 = vsub.f32 %v622_v14, %v630_v15  ;;  %v532_v22 = vrot.slane %v2794_v19, 4  ;;  %v560_v23 = vmul.f32 %v2794_v19, %v2794_v19  ;;  %v2800_v24 = vpop.f32.mrb[9].mxu1 }
 0x145   :  { %v639_v25 = vsub.f32 %v623_v17, %v631_v18  ;;  %v538_v26 = vrot.slane %v2800_v24, 4  ;;  %v561_v27 = vmul.f32 %v2800_v24, %v2800_v24  ;;  %v464_v28 = vpop.f32.mrb[10].mxu1 }
 0x146   :  { %v647_v29 = vadd.f32 1e-05, %v638_v21  ;;  %v533_v30 = vadd.f32 %v532_v22, %v2794_v19  ;;  %v588_v31 = vrot.slane %v560_v23, 4  ;;  %v465_v33 = vpop.f32.mrb[11].mxu1  ;;  %v679_v18 = vrot.slane %v669_v20, %v2812_v63 }
 0x147   :  { %v648_v35 = vadd.f32 1e-05, %v639_v25  ;;  %v539_v36 = vadd.f32 %v538_v26, %v2800_v24  ;;  %v594_v37 = vrot.slane %v561_v27, 4 }
 0x148   :  { %2469 = vrsqrt.f32 %v647_v29  ;;  %v534_v41 = vrot.slane %v533_v30, 2  ;;  %v589_v42 = vadd.f32 %v588_v31, %v560_v23 }
 0x149   :  { %2471 = vrsqrt.f32 %v648_v35  ;;  %v540_v45 = vrot.slane %v539_v36, 2  ;;  %v595_v46 = vadd.f32 %v594_v37, %v561_v27 }
 0x14a   :  { %v535_v47 = vadd.f32 %v534_v41, %v533_v30  ;;  %v590_v48 = vrot.slane %v589_v42, 2 }
 0x14b   :  { %v541_v49 = vadd.f32 %v540_v45, %v539_v36  ;;  %v596_v50 = vrot.slane %v595_v46, 2 }
 0x14c   :  { %v536_v51 = vrot.slane %v535_v47, 1  ;;  %v591_v52 = vadd.f32 %v590_v48, %v589_v42 }
 0x14d   :  { %v542_v55 = vrot.slane %v541_v49, 1  ;;  %v597_v56 = vadd.f32 %v596_v50, %v595_v46 }
 0x14e   :  { %v537_v57 = vadd.f32 %v536_v51, %v535_v47  ;;  %v592_v58 = vrot.slane %v591_v52, 1 }
 0x14f   :  { %v543_v59 = vadd.f32 %v542_v55, %v541_v49  ;;  %v598_v60 = vrot.slane %v597_v56, 1 }
 0x150   :  { %v593_v61 = vadd.f32 %v592_v58, %v591_v52  ;;  %v2809_v62 = vmul.f32 0.125, %v537_v57 }
 0x151   :  { %v599_v1 = vadd.f32 %v598_v60, %v597_v56  ;;  %v2814_v2 = vmul.f32 0.125, %v543_v59 }
 0x152   :  { %v2470_v3 = vpop.eup %2469  ;;  %v624_v5 = vmul.f32 0.125, %v593_v61  ;;  %v632_v0 = vmul.f32 %v2809_v62, %v2809_v62 }
 0x153   :  { %v2472_v7 = vpop.eup %2471  ;;  %v625_v8 = vmul.f32 0.125, %v599_v1  ;;  %v633_v9 = vmul.f32 %v2814_v2, %v2814_v2  ;;  %v2820_v11 = vpop.f32.mrb[12].mxu1 }
 0x154   :  { %v670_v13 = vcombine.low %v2470_v3, %v2472_v7  ;;  %v640_v14 = vsub.f32 %v624_v5, %v632_v0  ;;  %v544_v15 = vrot.slane %v2820_v11, 4  ;;  %v562_v16 = vmul.f32 %v2820_v11, %v2820_v11  ;;  %v2825_v17 = vpop.f32.mrb[13].mxu1 }
 0x155   :  { %v641_v21 = vsub.f32 %v625_v8, %v633_v9  ;;  %v550_v22 = vrot.slane %v2825_v17, 4  ;;  %v563_v23 = vmul.f32 %v2825_v17, %v2825_v17  ;;  %v505_v25 = vpop.f32.mrb[14].mxu1 }
 0x156   :  { %v686_v26 = vrot.slane %v670_v13, %v2812_v63  ;;  %v649_v27 = vadd.f32 1e-05, %v640_v14  ;;  %v545_v28 = vadd.f32 %v544_v15, %v2820_v11  ;;  %v600_v29 = vrot.slane %v562_v16, 4  ;;  %v506_v30 = vpop.f32.mrb[15].mxu1 }
 0x157   :  { %v650_v31 = vadd.f32 1e-05, %v641_v21  ;;  %v551_v33 = vadd.f32 %v550_v22, %v2825_v17  ;;  %v606_v35 = vrot.slane %v563_v23, 4  ;;  %v2848_v30 = vsub.s32 2, %v2807_v54 }
 0x158   :  { %v701_v36 = vcombine.low %v679_v18, %v686_v26  ;;  %2473 = vrsqrt.f32 %v649_v27  ;;  %v546_v20 = vrot.slane %v545_v28, 2  ;;  %v601_v37 = vadd.f32 %v600_v29, %v562_v16  ;;  %v644_v26 = vld [vmem:[%s3036_s2] sm:$0xff] }
 0x159   :  { %2475 = vrsqrt.f32 %v650_v31  ;;  %v552_v38 = vrot.slane %v551_v33, 2  ;;  %v607_v40 = vadd.f32 %v606_v35, %v563_v23  ;;  %v2842_v27 = vsub.s32 0, %v2807_v54 }
 0x15a   :  { %v547_v41 = vadd.f32 %v546_v20, %v545_v28  ;;  %v602_v42 = vrot.slane %v601_v37, 2  ;;  %v709_v23 = vrot.slane %v701_v36, %v2812_v63  ;;  %v2845_v29 = vsub.s32 1, %v2807_v54 }
 0x15b   :  { %v553_v44 = vadd.f32 %v552_v38, %v551_v33  ;;  %v608_v45 = vrot.slane %v607_v40, 2  ;;  %v2851_v31 = vsub.s32 3, %v2807_v54  ;;  %v740_v33 = vsub.s32 4, %v2807_v54 }
 0x15c   :  { %v548_v46 = vrot.slane %v547_v41, 1  ;;  %v603_v47 = vadd.f32 %v602_v42, %v601_v37  ;;  %v744_v35 = vsub.s32 5, %v2807_v54  ;;  %v748_v36 = vsub.s32 6, %v2807_v54 }
 0x15d   :  { %v554_v48 = vrot.slane %v553_v44, 1  ;;  %v609_v49 = vadd.f32 %v608_v45, %v607_v40  ;;  %v752_v20 = vsub.s32 7, %v2807_v54 }
 0x15e   :  { %v549_v50 = vadd.f32 %v548_v46, %v547_v41  ;;  %v604_v51 = vrot.slane %v603_v47, 1 }
 0x15f   :  { %v555_v52 = vadd.f32 %v554_v48, %v553_v44  ;;  %v610_v53 = vrot.slane %v609_v49, 1 }
 0x160   :  { %v605_v55 = vadd.f32 %v604_v51, %v603_v47  ;;  %v618_v56 = vmul.f32 0.125, %v549_v50 }
 0x161   :  { %v611_v57 = vadd.f32 %v610_v53, %v609_v49  ;;  %v619_v58 = vmul.f32 0.125, %v555_v52 }
 0x162   :  { %v2474_v59 = vpop.eup %2473  ;;  %v626_v60 = vmul.f32 0.125, %v605_v55  ;;  %v634_v61 = vmul.f32 %v618_v56, %v618_v56 }
 0x163   :  { %v2476_v1 = vpop.eup %2475  ;;  %v627_v3 = vmul.f32 0.125, %v611_v57  ;;  %v635_v5 = vmul.f32 %v619_v58, %v619_v58 }
 0x164   :  { %v671_v0 = vcombine.low %v2474_v59, %v2476_v1  ;;  %v642_v7 = vsub.f32 %v626_v60, %v634_v61 }
 0x165   :  { %v643_v8 = vsub.f32 %v627_v3, %v635_v5 }
 0x166   :  { %v651_v9 = vadd.f32 1e-05, %v642_v7  ;;  %v693_v18 = vrot.slane %v671_v0, %v2812_v63 }
 0x167   :  { %v652_v13 = vadd.f32 1e-05, %v643_v8 }
 0x168   :  { %2477 = vrsqrt.f32 %v651_v9 }
 0x169   :  { %2479 = vrsqrt.f32 %v652_v13 }
 0x172   :  { %v2478_v14 = vpop.eup %2477 }
 0x173   :  { %v2480_v15 = vpop.eup %2479 }
 0x174   :  { %v672_v16 = vcombine.low %v2478_v14, %v2480_v15 }
 0x176   :  { %v700_v21 = vrot.slane %v672_v16, %v2812_v63 }
 0x178   :  { %v702_v22 = vcombine.low %v693_v18, %v700_v21 }
 0x17a   :  { %v716_v25 = vrot.slane %v702_v22, %v2812_v63 }
 0x17c   :  { %v717_v28 = vcombine.low %v709_v23, %v716_v25 }
 0x17e   :  { %v719_v37 = vmul.f32 %v717_v28, %v644_v26 }
 0x180   :  { %v725_v38 = vrot.slane %v719_v37, %v2842_v27  ;;  %v729_v40 = vrot.slane %v719_v37, %v2845_v29  ;;  %v733_v41 = vrot.slane %v719_v37, %v2848_v30  ;;  %v737_v42 = vrot.slane %v719_v37, %v2851_v31 }
 0x181   :  { %v741_v44 = vrot.slane %v719_v37, %v740_v33  ;;  %v745_v45 = vrot.slane %v719_v37, %v744_v35  ;;  %v749_v46 = vrot.slane %v719_v37, %v748_v36  ;;  %v753_v47 = vrot.slane %v719_v37, %v752_v20 }
 0x182   :  { %v762_v48 = vmul.f32 %v725_v38, %v2764_v32  ;;  %v763_v49 = vmul.f32 %v729_v40, %v2766_v34  ;;  %v764_v50 = vmul.f32 %v733_v41, %v2784_v10  ;;  %v765_v54 = vmul.f32 %v737_v42, %v2786_v12 }
 0x183   :  { %v766_v51 = vmul.f32 %v741_v44, %v2809_v62  ;;  %v767_v52 = vmul.f32 %v745_v45, %v2814_v2  ;;  %v768_v53 = vmul.f32 %v749_v46, %v618_v56  ;;  %v769_v55 = vmul.f32 %v753_v47, %v619_v58 }
 0x184   :  { %v778_v57 = vcombine.low %v762_v48, %v763_v49  ;;  %v779_v59 = vcombine.low %v764_v50, %v765_v54  ;;  %v829_v60 = vmul.f32 %v725_v38, %v2752_v4  ;;  %v830_v61 = vmul.f32 %v729_v40, %v2757_v6 }
 0x185   :  { %v780_v1 = vcombine.low %v766_v51, %v767_v52  ;;  %v781_v32 = vcombine.low %v768_v53, %v769_v55  ;;  %v831_v34 = vmul.f32 %v733_v41, %v2772_v39  ;;  %v832_v10 = vmul.f32 %v737_v42, %v2777_v43 }
 0x186   :  { %v788_v12 = vrot.slane %v778_v57, %v2812_v63  ;;  %v795_v62 = vrot.slane %v779_v59, %v2812_v63  ;;  %v833_v2 = vmul.f32 %v741_v44, %v2794_v19  ;;  %v834_v56 = vmul.f32 %v745_v45, %v2800_v24  ;;  %v720_v19 = vld [vmem:[%s3037_s3] sm:$0xff] }
 0x187   :  { %v802_v58 = vrot.slane %v780_v1, %v2812_v63  ;;  %v809_v4 = vrot.slane %v781_v32, %v2812_v63  ;;  %v835_v6 = vmul.f32 %v749_v46, %v2820_v11  ;;  %v836_v3 = vmul.f32 %v753_v47, %v2825_v17 }
 0x188   :  { %v810_v5 = vcombine.low %v788_v12, %v795_v62 }
 0x189   :  { %v811_v39 = vcombine.low %v802_v58, %v809_v4 }
 0x18a   :  { %v818_v43 = vrot.slane %v810_v5, %v2812_v63 }
 0x18b   :  { %v825_v0 = vrot.slane %v811_v39, %v2812_v63 }
 0x18d   :  { %v826_v7 = vcombine.low %v818_v43, %v825_v0 }
 0x18f   :  { %v828_v24 = vsub.f32 %v720_v19, %v826_v7 }
 0x191   :  { %v841_v8 = vrot.slane %v828_v24, %v2842_v27  ;;  %v845_v9 = vrot.slane %v828_v24, %v2845_v29  ;;  %v849_v11 = vrot.slane %v828_v24, %v2848_v30  ;;  %v853_v17 = vrot.slane %v828_v24, %v2851_v31 }
 0x192   :  { %v857_v13 = vrot.slane %v828_v24, %v740_v33  ;;  %v861_v14 = vrot.slane %v828_v24, %v744_v35  ;;  %v865_v15 = vrot.slane %v828_v24, %v748_v36  ;;  %v869_v16 = vrot.slane %v828_v24, %v752_v20 }
 0x193   :  { %v878_v18 = vadd.f32 %v841_v8, %v829_v60  ;;  %v879_v21 = vadd.f32 %v845_v9, %v830_v61  ;;  %v880_v22 = vadd.f32 %v849_v11, %v831_v34  ;;  %v881_v23 = vadd.f32 %v853_v17, %v832_v10 }
 0x194   :  { %v882_v25 = vadd.f32 %v857_v13, %v833_v2  ;;  %v883_v26 = vadd.f32 %v861_v14, %v834_v56  ;;  %v884_v28 = vadd.f32 %v865_v15, %v835_v6  ;;  %v885_v37 = vadd.f32 %v869_v16, %v836_v3 }
 0x195   :  { %v886_v38 = vmax.f32 %v878_v18, 0.0  ;;  %v887_v40 = vmax.f32 %v879_v21, 0.0  ;;  %v888_v41 = vmax.f32 %v880_v22, 0.0  ;;  %v889_v42 = vmax.f32 %v881_v23, 0.0 }
 0x196   :  { %v890_v44 = vmax.f32 %v882_v25, 0.0  ;;  %v891_v45 = vmax.f32 %v883_v26, 0.0  ;;  %v892_v46 = vmax.f32 %v884_v28, 0.0  ;;  %v893_v47 = vmax.f32 %v885_v37, 0.0 }
 0x197   :  { %v2888_v33 = vpack.c.bf16 %v886_v38, %v886_v38  ;;  %v895_v35 = vpack.c.bf16 %v887_v40, %v887_v40  ;;  %v2890_v36 = vpack.c.bf16 %v888_v41, %v888_v41  ;;  %v2892_v20 = vpack.c.bf16 %v889_v42, %v889_v42 }
 0x198   :  { %v2894_v48 = vpack.c.bf16 %v890_v44, %v890_v44  ;;  %v2896_v49 = vpack.c.bf16 %v891_v45, %v891_v45  ;;  %v2898_v50 = vpack.c.bf16 %v892_v46, %v892_v46  ;;  %v2900_v54 = vpack.c.bf16 %v893_v47, %v893_v47 }
 0x199   :  { %2589 = dma.done.wait [#allocation4], 32768 }
 0x19a   :  { %2590 = vsyncadd [#allocation4], 4294934528  ;;  %1194 = vmatprep.mubr.bf16.mxu0 %v895_v35  ;;  %1358 = vmatprep.mubr.bf16.mxu1 %v895_v35  ;;  %v907_v51 = vld [vmem:[#allocation2 + $0x8] sm:$0xff]  ;;  %v909_v52 = vld [vmem:[#allocation2 + $0x18] sm:$0xff] }
 0x19b   :  { %v906_v53 = vld [vmem:[#allocation2] sm:$0xff]  ;;  %1162 = vmatprep.subr.bf16.mxu0 %v907_v51  ;;  %1326 = vmatprep.subr.bf16.mxu1 %v909_v52  ;;  %v908_v55 = vld [vmem:[#allocation2 + $0x10] sm:$0xff]  ;;  %v911_v57 = vld [vmem:[#allocation2 + $0x28] sm:$0xff] }
 0x19c   :  { %v913_v59 = vld [vmem:[#allocation2 + $0x38] sm:$0xff]  ;;  %1163 = vmatpush1.bf16.msra.mxu0 %v906_v53  ;;  %1327 = vmatpush1.bf16.msra.mxu1 %v908_v55  ;;  %v910_v60 = vld [vmem:[#allocation2 + $0x20] sm:$0xff]  ;;  %v912_v61 = vld [vmem:[#allocation2 + $0x30] sm:$0xff] }
 0x19d   :  { %1164 = vmatprep.subr.bf16.mxu0 %v911_v57  ;;  %1328 = vmatprep.subr.bf16.mxu1 %v913_v59  ;;  %v915_v1 = vld [vmem:[#allocation2 + $0x48] sm:$0xff]  ;;  %v917_v32 = vld [vmem:[#allocation2 + $0x58] sm:$0xff]  ;;  %v914_v34 = vld [vmem:[#allocation2 + $0x40] sm:$0xff] }
 0x19e   :  { %v916_v10 = vld [vmem:[#allocation2 + $0x50] sm:$0xff]  ;;  %v919_v12 = vld [vmem:[#allocation2 + $0x68] sm:$0xff]  ;;  %v921_v62 = vld [vmem:[#allocation2 + $0x78] sm:$0xff] }
 0x19f   :  { %v918_v2 = vld [vmem:[#allocation2 + $0x60] sm:$0xff]  ;;  %v920_v56 = vld [vmem:[#allocation2 + $0x70] sm:$0xff]  ;;  %v923_v58 = vld [vmem:[#allocation2 + $0x88] sm:$0xff] }
 0x1a0   :  { %1165 = vmatpush1.bf16.msra.mxu0 %v910_v60  ;;  %1329 = vmatpush1.bf16.msra.mxu1 %v912_v61  ;;  %v925_v4 = vld [vmem:[#allocation2 + $0x98] sm:$0xff]  ;;  %v922_v6 = vld [vmem:[#allocation2 + $0x80] sm:$0xff]  ;;  %v924_v3 = vld [vmem:[#allocation2 + $0x90] sm:$0xff] }
 0x1a1   :  { %1166 = vmatprep.subr.bf16.mxu0 %v915_v1  ;;  %1330 = vmatprep.subr.bf16.mxu1 %v917_v32  ;;  %v927_v5 = vld [vmem:[#allocation2 + $0xa8] sm:$0xff]  ;;  %v929_v39 = vld [vmem:[#allocation2 + $0xb8] sm:$0xff]  ;;  %v926_v43 = vld [vmem:[#allocation2 + $0xa0] sm:$0xff] }
 0x1a2   :  { %v928_v0 = vld [vmem:[#allocation2 + $0xb0] sm:$0xff]  ;;  %v931_v19 = vld [vmem:[#allocation2 + $0xc8] sm:$0xff]  ;;  %v933_v7 = vld [vmem:[#allocation2 + $0xd8] sm:$0xff] }
 0x1a3   :  { %v930_v24 = vld [vmem:[#allocation2 + $0xc0] sm:$0xff]  ;;  %v932_v8 = vld [vmem:[#allocation2 + $0xd0] sm:$0xff]  ;;  %v935_v9 = vld [vmem:[#allocation2 + $0xe8] sm:$0xff] }
 0x1a4   :  { %1167 = vmatpush1.bf16.msra.mxu0 %v914_v34  ;;  %1331 = vmatpush1.bf16.msra.mxu1 %v916_v10  ;;  %v937_v11 = vld [vmem:[#allocation2 + $0xf8] sm:$0xff]  ;;  %v934_v17 = vld [vmem:[#allocation2 + $0xe0] sm:$0xff]  ;;  %v936_v13 = vld [vmem:[#allocation2 + $0xf0] sm:$0xff] }
 0x1a5   :  { %1168 = vmatprep.subr.bf16.mxu0 %v919_v12  ;;  %1332 = vmatprep.subr.bf16.mxu1 %v921_v62  ;;  %v939_v14 = vld [vmem:[#allocation2 + $0x108] sm:$0xff]  ;;  %v941_v15 = vld [vmem:[#allocation2 + $0x118] sm:$0xff]  ;;  %v938_v16 = vld [vmem:[#allocation2 + $0x100] sm:$0xff] }
 0x1a6   :  { %v940_v18 = vld [vmem:[#allocation2 + $0x110] sm:$0xff]  ;;  %v943_v21 = vld [vmem:[#allocation2 + $0x128] sm:$0xff]  ;;  %v945_v22 = vld [vmem:[#allocation2 + $0x138] sm:$0xff] }
 0x1a7   :  { %v942_v23 = vld [vmem:[#allocation2 + $0x120] sm:$0xff]  ;;  %v944_v25 = vld [vmem:[#allocation2 + $0x130] sm:$0xff]  ;;  %v947_v26 = vld [vmem:[#allocation2 + $0x148] sm:$0xff] }
 0x1a8   :  { %1169 = vmatpush1.bf16.msra.mxu0 %v918_v2  ;;  %1333 = vmatpush1.bf16.msra.mxu1 %v920_v56  ;;  %v949_v28 = vld [vmem:[#allocation2 + $0x158] sm:$0xff]  ;;  %v946_v37 = vld [vmem:[#allocation2 + $0x140] sm:$0xff]  ;;  %v948_v38 = vld [vmem:[#allocation2 + $0x150] sm:$0xff] }
 0x1a9   :  { %1170 = vmatprep.subr.bf16.mxu0 %v923_v58  ;;  %1334 = vmatprep.subr.bf16.mxu1 %v925_v4  ;;  %v951_v40 = vld [vmem:[#allocation2 + $0x168] sm:$0xff]  ;;  %v953_v41 = vld [vmem:[#allocation2 + $0x178] sm:$0xff]  ;;  %v950_v42 = vld [vmem:[#allocation2 + $0x160] sm:$0xff] }
 0x1aa   :  { %v952_v44 = vld [vmem:[#allocation2 + $0x170] sm:$0xff]  ;;  %v955_v45 = vld [vmem:[#allocation2 + $0x188] sm:$0xff]  ;;  %v957_v46 = vld [vmem:[#allocation2 + $0x198] sm:$0xff] }
 0x1ab   :  { %v954_v47 = vld [vmem:[#allocation2 + $0x180] sm:$0xff]  ;;  %v956_v35 = vld [vmem:[#allocation2 + $0x190] sm:$0xff]  ;;  %v959_v51 = vld [vmem:[#allocation2 + $0x1a8] sm:$0xff] }
 0x1ac   :  { %1171 = vmatpush1.bf16.msra.mxu0 %v922_v6  ;;  %1335 = vmatpush1.bf16.msra.mxu1 %v924_v3  ;;  %v961_v52 = vld [vmem:[#allocation2 + $0x1b8] sm:$0xff]  ;;  %v958_v53 = vld [vmem:[#allocation2 + $0x1a0] sm:$0xff]  ;;  %v960_v55 = vld [vmem:[#allocation2 + $0x1b0] sm:$0xff] }
 0x1ad   :  { %1172 = vmatprep.subr.bf16.mxu0 %v927_v5  ;;  %1336 = vmatprep.subr.bf16.mxu1 %v929_v39  ;;  %v963_v57 = vld [vmem:[#allocation2 + $0x1c8] sm:$0xff]  ;;  %v965_v59 = vld [vmem:[#allocation2 + $0x1d8] sm:$0xff]  ;;  %v962_v60 = vld [vmem:[#allocation2 + $0x1c0] sm:$0xff] }
 0x1ae   :  { %v964_v61 = vld [vmem:[#allocation2 + $0x1d0] sm:$0xff]  ;;  %v967_v1 = vld [vmem:[#allocation2 + $0x1e8] sm:$0xff]  ;;  %v969_v32 = vld [vmem:[#allocation2 + $0x1f8] sm:$0xff] }
 0x1af   :  { %v966_v34 = vld [vmem:[#allocation2 + $0x1e0] sm:$0xff]  ;;  %v968_v10 = vld [vmem:[#allocation2 + $0x1f0] sm:$0xff]  ;;  %v971_v12 = vld [vmem:[#allocation2 + $0x208] sm:$0xff] }
 0x1b0   :  { %1173 = vmatpush1.bf16.msra.mxu0 %v926_v43  ;;  %1337 = vmatpush1.bf16.msra.mxu1 %v928_v0  ;;  %v973_v62 = vld [vmem:[#allocation2 + $0x218] sm:$0xff]  ;;  %v970_v2 = vld [vmem:[#allocation2 + $0x200] sm:$0xff]  ;;  %v972_v56 = vld [vmem:[#allocation2 + $0x210] sm:$0xff] }
 0x1b1   :  { %1174 = vmatprep.subr.bf16.mxu0 %v931_v19  ;;  %1338 = vmatprep.subr.bf16.mxu1 %v933_v7  ;;  %v975_v58 = vld [vmem:[#allocation2 + $0x228] sm:$0xff]  ;;  %v977_v4 = vld [vmem:[#allocation2 + $0x238] sm:$0xff]  ;;  %v974_v6 = vld [vmem:[#allocation2 + $0x220] sm:$0xff] }
 0x1b2   :  { %v976_v3 = vld [vmem:[#allocation2 + $0x230] sm:$0xff]  ;;  %v979_v5 = vld [vmem:[#allocation2 + $0x248] sm:$0xff]  ;;  %v981_v39 = vld [vmem:[#allocation2 + $0x258] sm:$0xff] }
 0x1b3   :  { %v978_v43 = vld [vmem:[#allocation2 + $0x240] sm:$0xff]  ;;  %v980_v0 = vld [vmem:[#allocation2 + $0x250] sm:$0xff]  ;;  %v983_v19 = vld [vmem:[#allocation2 + $0x268] sm:$0xff] }
 0x1b4   :  { %1175 = vmatpush1.bf16.msra.mxu0 %v930_v24  ;;  %1339 = vmatpush1.bf16.msra.mxu1 %v932_v8  ;;  %v982_v7 = vld [vmem:[#allocation2 + $0x260] sm:$0xff]  ;;  %v984_v24 = vld [vmem:[#allocation2 + $0x270] sm:$0xff]  ;;  %v987_v8 = vld [vmem:[#allocation2 + $0x288] sm:$0xff] }
 0x1b5   :  { %1176 = vmatprep.subr.bf16.mxu0 %v935_v9  ;;  %1340 = vmatprep.subr.bf16.mxu1 %v937_v11  ;;  %v989_v9 = vld [vmem:[#allocation2 + $0x298] sm:$0xff]  ;;  %v988_v11 = vld [vmem:[#allocation2 + $0x290] sm:$0xff] }
 0x1b8   :  { %1177 = vmatpush1.bf16.msra.mxu0 %v934_v17  ;;  %1341 = vmatpush1.bf16.msra.mxu1 %v936_v13  ;;  %v991_v17 = vld [vmem:[#allocation2 + $0x2a8] sm:$0xff]  ;;  %v993_v13 = vld [vmem:[#allocation2 + $0x2b8] sm:$0xff] }
 0x1b9   :  { %1178 = vmatprep.subr.bf16.mxu0 %v939_v14  ;;  %1342 = vmatprep.subr.bf16.mxu1 %v941_v15  ;;  %v990_v14 = vld [vmem:[#allocation2 + $0x2a0] sm:$0xff]  ;;  %v992_v15 = vld [vmem:[#allocation2 + $0x2b0] sm:$0xff] }
 0x1bc   :  { %1179 = vmatpush1.bf16.msra.mxu0 %v938_v16  ;;  %1343 = vmatpush1.bf16.msra.mxu1 %v940_v18  ;;  %v995_v16 = vld [vmem:[#allocation2 + $0x2c8] sm:$0xff]  ;;  %v997_v18 = vld [vmem:[#allocation2 + $0x2d8] sm:$0xff] }
 0x1bd   :  { %1180 = vmatprep.subr.bf16.mxu0 %v943_v21  ;;  %1344 = vmatprep.subr.bf16.mxu1 %v945_v22  ;;  %v994_v21 = vld [vmem:[#allocation2 + $0x2c0] sm:$0xff]  ;;  %v996_v22 = vld [vmem:[#allocation2 + $0x2d0] sm:$0xff] }
 0x1c0   :  { %1181 = vmatpush1.bf16.msra.mxu0 %v942_v23  ;;  %1345 = vmatpush1.bf16.msra.mxu1 %v944_v25  ;;  %v999_v23 = vld [vmem:[#allocation2 + $0x2e8] sm:$0xff]  ;;  %v1001_v25 = vld [vmem:[#allocation2 + $0x2f8] sm:$0xff] }
 0x1c1   :  { %1182 = vmatprep.subr.bf16.mxu0 %v947_v26  ;;  %1346 = vmatprep.subr.bf16.mxu1 %v949_v28  ;;  %v998_v26 = vld [vmem:[#allocation2 + $0x2e0] sm:$0xff]  ;;  %v1000_v28 = vld [vmem:[#allocation2 + $0x2f0] sm:$0xff] }
 0x1c4   :  { %1183 = vmatpush1.bf16.msra.mxu0 %v946_v37  ;;  %1347 = vmatpush1.bf16.msra.mxu1 %v948_v38  ;;  %v1003_v37 = vld [vmem:[#allocation2 + $0x308] sm:$0xff]  ;;  %v1005_v38 = vld [vmem:[#allocation2 + $0x318] sm:$0xff] }
 0x1c5   :  { %1184 = vmatprep.subr.bf16.mxu0 %v951_v40  ;;  %1348 = vmatprep.subr.bf16.mxu1 %v953_v41  ;;  %v1002_v40 = vld [vmem:[#allocation2 + $0x300] sm:$0xff]  ;;  %v1004_v41 = vld [vmem:[#allocation2 + $0x310] sm:$0xff] }
 0x1c8   :  { %1185 = vmatpush1.bf16.msra.mxu0 %v950_v42  ;;  %1349 = vmatpush1.bf16.msra.mxu1 %v952_v44  ;;  %v1007_v42 = vld [vmem:[#allocation2 + $0x328] sm:$0xff]  ;;  %v1009_v44 = vld [vmem:[#allocation2 + $0x338] sm:$0xff] }
 0x1c9   :  { %1186 = vmatprep.subr.bf16.mxu0 %v955_v45  ;;  %1350 = vmatprep.subr.bf16.mxu1 %v957_v46  ;;  %v1006_v45 = vld [vmem:[#allocation2 + $0x320] sm:$0xff]  ;;  %v1008_v46 = vld [vmem:[#allocation2 + $0x330] sm:$0xff] }
 0x1cc   :  { %1187 = vmatpush1.bf16.msra.mxu0 %v954_v47  ;;  %1351 = vmatpush1.bf16.msra.mxu1 %v956_v35  ;;  %v1011_v47 = vld [vmem:[#allocation2 + $0x348] sm:$0xff]  ;;  %v1013_v35 = vld [vmem:[#allocation2 + $0x358] sm:$0xff] }
 0x1cd   :  { %1188 = vmatprep.subr.bf16.mxu0 %v959_v51  ;;  %1352 = vmatprep.subr.bf16.mxu1 %v961_v52  ;;  %v1010_v51 = vld [vmem:[#allocation2 + $0x340] sm:$0xff]  ;;  %v1012_v52 = vld [vmem:[#allocation2 + $0x350] sm:$0xff] }
 0x1d0   :  { %1189 = vmatpush1.bf16.msra.mxu0 %v958_v53  ;;  %1353 = vmatpush1.bf16.msra.mxu1 %v960_v55  ;;  %v1015_v53 = vld [vmem:[#allocation2 + $0x368] sm:$0xff]  ;;  %v1017_v55 = vld [vmem:[#allocation2 + $0x378] sm:$0xff] }
 0x1d1   :  { %1190 = vmatprep.subr.bf16.mxu0 %v963_v57  ;;  %1354 = vmatprep.subr.bf16.mxu1 %v965_v59  ;;  %v1014_v57 = vld [vmem:[#allocation2 + $0x360] sm:$0xff]  ;;  %v1016_v59 = vld [vmem:[#allocation2 + $0x370] sm:$0xff] }
 0x1d4   :  { %1191 = vmatpush1.bf16.msra.mxu0 %v962_v60  ;;  %1355 = vmatpush1.bf16.msra.mxu1 %v964_v61  ;;  %v1019_v60 = vld [vmem:[#allocation2 + $0x388] sm:$0xff]  ;;  %v1021_v61 = vld [vmem:[#allocation2 + $0x398] sm:$0xff] }
 0x1d5   :  { %1192 = vmatprep.subr.bf16.mxu0 %v967_v1  ;;  %1356 = vmatprep.subr.bf16.mxu1 %v969_v32  ;;  %v1018_v1 = vld [vmem:[#allocation2 + $0x380] sm:$0xff]  ;;  %v1020_v32 = vld [vmem:[#allocation2 + $0x390] sm:$0xff] }
 0x1d8   :  { %1193 = vmatpush1.bf16.msra.mxu0 %v966_v34  ;;  %1357 = vmatpush1.bf16.msra.mxu1 %v968_v10  ;;  %v1023_v34 = vld [vmem:[#allocation2 + $0x3a8] sm:$0xff]  ;;  %v1025_v10 = vld [vmem:[#allocation2 + $0x3b8] sm:$0xff] }
 0x1d9   :  { %1203 = vmatprep.subr.bf16.mxu0 %v971_v12  ;;  %1367 = vmatprep.subr.bf16.mxu1 %v973_v62  ;;  %v1022_v12 = vld [vmem:[#allocation2 + $0x3a0] sm:$0xff]  ;;  %v1024_v62 = vld [vmem:[#allocation2 + $0x3b0] sm:$0xff] }
 0x1db   :  { %1195 = vmatmul.mubr.bf16.vlgmr.msra.gmra.mrb[0].mxu0 %v2888_v33  ;;  %1359 = vmatmul.mubr.bf16.vlgmr.msra.gmra.mrb[16].mxu1 %v2888_v33  ;;  %v985_v33 = vld [vmem:[#allocation2 + $0x278] sm:$0xff] }
 0x1dc   :  { %1204 = vmatpush1.bf16.msra.mxu0 %v970_v2  ;;  %1368 = vmatpush1.bf16.msra.mxu1 %v972_v56  ;;  %v1027_v2 = vld [vmem:[#allocation2 + $0x3c8] sm:$0xff]  ;;  %v1029_v56 = vld [vmem:[#allocation2 + $0x3d8] sm:$0xff] }
 0x1dd   :  { %1205 = vmatprep.subr.bf16.mxu0 %v975_v58  ;;  %1369 = vmatprep.subr.bf16.mxu1 %v977_v4  ;;  %v1026_v58 = vld [vmem:[#allocation2 + $0x3c0] sm:$0xff]  ;;  %v1028_v4 = vld [vmem:[#allocation2 + $0x3d0] sm:$0xff] }
 0x1de   :  { %1235 = vmatprep.mubr.bf16.mxu0 %v2892_v20  ;;  %1399 = vmatprep.mubr.bf16.mxu1 %v2892_v20  ;;  %v986_v20 = vld [vmem:[#allocation2 + $0x280] sm:$0xff] }
 0x1e0   :  { %1206 = vmatpush1.bf16.msra.mxu0 %v974_v6  ;;  %1370 = vmatpush1.bf16.msra.mxu1 %v976_v3  ;;  %v1031_v6 = vld [vmem:[#allocation2 + $0x3e8] sm:$0xff]  ;;  %v1033_v3 = vld [vmem:[#allocation2 + $0x3f8] sm:$0xff] }
 0x1e1   :  { %1207 = vmatprep.subr.bf16.mxu0 %v979_v5  ;;  %1371 = vmatprep.subr.bf16.mxu1 %v981_v39  ;;  %v1030_v5 = vld [vmem:[#allocation2 + $0x3e0] sm:$0xff]  ;;  %v1032_v39 = vld [vmem:[#allocation2 + $0x3f0] sm:$0xff] }
 0x1e4   :  { %1208 = vmatpush1.bf16.msra.mxu0 %v978_v43  ;;  %1372 = vmatpush1.bf16.msra.mxu1 %v980_v0  ;;  %v1035_v43 = vld [vmem:[#allocation2 + $0x408] sm:$0xff]  ;;  %v1037_v0 = vld [vmem:[#allocation2 + $0x418] sm:$0xff] }
 0x1e5   :  { %1209 = vmatprep.subr.bf16.mxu0 %v983_v19  ;;  %1373 = vmatprep.subr.bf16.mxu1 %v985_v33  ;;  %v1034_v19 = vld [vmem:[#allocation2 + $0x400] sm:$0xff]  ;;  %v1036_v33 = vld [vmem:[#allocation2 + $0x410] sm:$0xff] }
 0x1e8   :  { %1210 = vmatpush1.bf16.msra.mxu0 %v982_v7  ;;  %1374 = vmatpush1.bf16.msra.mxu1 %v984_v24  ;;  %v1039_v7 = vld [vmem:[#allocation2 + $0x428] sm:$0xff]  ;;  %v1041_v24 = vld [vmem:[#allocation2 + $0x438] sm:$0xff] }
 0x1e9   :  { %1211 = vmatprep.subr.bf16.mxu0 %v987_v8  ;;  %1375 = vmatprep.subr.bf16.mxu1 %v989_v9  ;;  %v1038_v8 = vld [vmem:[#allocation2 + $0x420] sm:$0xff]  ;;  %v1040_v9 = vld [vmem:[#allocation2 + $0x430] sm:$0xff] }
 0x1ec   :  { %1212 = vmatpush1.bf16.msra.mxu0 %v986_v20  ;;  %1376 = vmatpush1.bf16.msra.mxu1 %v988_v11  ;;  %v1043_v20 = vld [vmem:[#allocation2 + $0x448] sm:$0xff]  ;;  %v1045_v11 = vld [vmem:[#allocation2 + $0x458] sm:$0xff] }
 0x1ed   :  { %1213 = vmatprep.subr.bf16.mxu0 %v991_v17  ;;  %1377 = vmatprep.subr.bf16.mxu1 %v993_v13  ;;  %v1042_v17 = vld [vmem:[#allocation2 + $0x440] sm:$0xff]  ;;  %v1044_v13 = vld [vmem:[#allocation2 + $0x450] sm:$0xff] }
 0x1f0   :  { %1214 = vmatpush1.bf16.msra.mxu0 %v990_v14  ;;  %1378 = vmatpush1.bf16.msra.mxu1 %v992_v15  ;;  %v1047_v14 = vld [vmem:[#allocation2 + $0x468] sm:$0xff]  ;;  %v1046_v15 = vld [vmem:[#allocation2 + $0x460] sm:$0xff] }
 0x1f1   :  { %1215 = vmatprep.subr.bf16.mxu0 %v995_v16  ;;  %1379 = vmatprep.subr.bf16.mxu1 %v997_v18  ;;  %v1048_v16 = vld [vmem:[#allocation2 + $0x470] sm:$0xff]  ;;  %v1051_v18 = vld [vmem:[#allocation2 + $0x488] sm:$0xff] }
 0x1f4   :  { %1216 = vmatpush1.bf16.msra.mxu0 %v994_v21  ;;  %1380 = vmatpush1.bf16.msra.mxu1 %v996_v22  ;;  %v1053_v21 = vld [vmem:[#allocation2 + $0x498] sm:$0xff]  ;;  %v1052_v22 = vld [vmem:[#allocation2 + $0x490] sm:$0xff] }
 0x1f5   :  { %1217 = vmatprep.subr.bf16.mxu0 %v999_v23  ;;  %1381 = vmatprep.subr.bf16.mxu1 %v1001_v25  ;;  %v1055_v23 = vld [vmem:[#allocation2 + $0x4a8] sm:$0xff]  ;;  %v1057_v25 = vld [vmem:[#allocation2 + $0x4b8] sm:$0xff] }
 0x1f8   :  { %1218 = vmatpush1.bf16.msra.mxu0 %v998_v26  ;;  %1382 = vmatpush1.bf16.msra.mxu1 %v1000_v28  ;;  %v1054_v26 = vld [vmem:[#allocation2 + $0x4a0] sm:$0xff]  ;;  %v1056_v28 = vld [vmem:[#allocation2 + $0x4b0] sm:$0xff] }
 0x1f9   :  { %1219 = vmatprep.subr.bf16.mxu0 %v1003_v37  ;;  %1383 = vmatprep.subr.bf16.mxu1 %v1005_v38  ;;  %v1059_v37 = vld [vmem:[#allocation2 + $0x4c8] sm:$0xff]  ;;  %v1061_v38 = vld [vmem:[#allocation2 + $0x4d8] sm:$0xff] }
 0x1fc   :  { %1220 = vmatpush1.bf16.msra.mxu0 %v1002_v40  ;;  %1384 = vmatpush1.bf16.msra.mxu1 %v1004_v41  ;;  %v1058_v40 = vld [vmem:[#allocation2 + $0x4c0] sm:$0xff]  ;;  %v1060_v41 = vld [vmem:[#allocation2 + $0x4d0] sm:$0xff] }
 0x1fd   :  { %1221 = vmatprep.subr.bf16.mxu0 %v1007_v42  ;;  %1385 = vmatprep.subr.bf16.mxu1 %v1009_v44  ;;  %v1063_v42 = vld [vmem:[#allocation2 + $0x4e8] sm:$0xff]  ;;  %v1065_v44 = vld [vmem:[#allocation2 + $0x4f8] sm:$0xff] }
 0x200   :  { %1222 = vmatpush1.bf16.msra.mxu0 %v1006_v45  ;;  %1386 = vmatpush1.bf16.msra.mxu1 %v1008_v46  ;;  %v1062_v45 = vld [vmem:[#allocation2 + $0x4e0] sm:$0xff]  ;;  %v1064_v46 = vld [vmem:[#allocation2 + $0x4f0] sm:$0xff] }
 0x201   :  { %1223 = vmatprep.subr.bf16.mxu0 %v1011_v47  ;;  %1387 = vmatprep.subr.bf16.mxu1 %v1013_v35  ;;  %v1067_v47 = vld [vmem:[#allocation2 + $0x508] sm:$0xff]  ;;  %v1069_v35 = vld [vmem:[#allocation2 + $0x518] sm:$0xff] }
 0x204   :  { %1224 = vmatpush1.bf16.msra.mxu0 %v1010_v51  ;;  %1388 = vmatpush1.bf16.msra.mxu1 %v1012_v52  ;;  %v1066_v51 = vld [vmem:[#allocation2 + $0x500] sm:$0xff]  ;;  %v1068_v52 = vld [vmem:[#allocation2 + $0x510] sm:$0xff] }
 0x205   :  { %1225 = vmatprep.subr.bf16.mxu0 %v1015_v53  ;;  %1389 = vmatprep.subr.bf16.mxu1 %v1017_v55  ;;  %v1071_v53 = vld [vmem:[#allocation2 + $0x528] sm:$0xff]  ;;  %v1073_v55 = vld [vmem:[#allocation2 + $0x538] sm:$0xff] }
 0x208   :  { %1226 = vmatpush1.bf16.msra.mxu0 %v1014_v57  ;;  %1390 = vmatpush1.bf16.msra.mxu1 %v1016_v59  ;;  %v1070_v57 = vld [vmem:[#allocation2 + $0x520] sm:$0xff]  ;;  %v1072_v59 = vld [vmem:[#allocation2 + $0x530] sm:$0xff] }
 0x209   :  { %1227 = vmatprep.subr.bf16.mxu0 %v1019_v60  ;;  %1391 = vmatprep.subr.bf16.mxu1 %v1021_v61  ;;  %v1075_v60 = vld [vmem:[#allocation2 + $0x548] sm:$0xff]  ;;  %v1077_v61 = vld [vmem:[#allocation2 + $0x558] sm:$0xff] }
 0x20c   :  { %1228 = vmatpush1.bf16.msra.mxu0 %v1018_v1  ;;  %1392 = vmatpush1.bf16.msra.mxu1 %v1020_v32  ;;  %v1074_v1 = vld [vmem:[#allocation2 + $0x540] sm:$0xff]  ;;  %v1076_v32 = vld [vmem:[#allocation2 + $0x550] sm:$0xff] }
 0x20d   :  { %1229 = vmatprep.subr.bf16.mxu0 %v1023_v34  ;;  %1393 = vmatprep.subr.bf16.mxu1 %v1025_v10  ;;  %v1079_v34 = vld [vmem:[#allocation2 + $0x568] sm:$0xff]  ;;  %v1081_v10 = vld [vmem:[#allocation2 + $0x578] sm:$0xff] }
 0x210   :  { %1230 = vmatpush1.bf16.msra.mxu0 %v1022_v12  ;;  %1394 = vmatpush1.bf16.msra.mxu1 %v1024_v62  ;;  %v1078_v12 = vld [vmem:[#allocation2 + $0x560] sm:$0xff]  ;;  %v1080_v62 = vld [vmem:[#allocation2 + $0x570] sm:$0xff] }
 0x211   :  { %1231 = vmatprep.subr.bf16.mxu0 %v1027_v2  ;;  %1395 = vmatprep.subr.bf16.mxu1 %v1029_v56  ;;  %v1083_v2 = vld [vmem:[#allocation2 + $0x588] sm:$0xff]  ;;  %v1085_v56 = vld [vmem:[#allocation2 + $0x598] sm:$0xff] }
 0x214   :  { %1232 = vmatpush1.bf16.msra.mxu0 %v1026_v58  ;;  %1396 = vmatpush1.bf16.msra.mxu1 %v1028_v4  ;;  %v1082_v58 = vld [vmem:[#allocation2 + $0x580] sm:$0xff]  ;;  %v1084_v4 = vld [vmem:[#allocation2 + $0x590] sm:$0xff] }
 0x215   :  { %1233 = vmatprep.subr.bf16.mxu0 %v1031_v6  ;;  %1397 = vmatprep.subr.bf16.mxu1 %v1033_v3  ;;  %v1087_v6 = vld [vmem:[#allocation2 + $0x5a8] sm:$0xff]  ;;  %v1089_v3 = vld [vmem:[#allocation2 + $0x5b8] sm:$0xff] }
 0x218   :  { %1234 = vmatpush1.bf16.msra.mxu0 %v1030_v5  ;;  %1398 = vmatpush1.bf16.msra.mxu1 %v1032_v39  ;;  %v1086_v5 = vld [vmem:[#allocation2 + $0x5a0] sm:$0xff]  ;;  %v1088_v39 = vld [vmem:[#allocation2 + $0x5b0] sm:$0xff] }
 0x219   :  { %1244 = vmatprep.subr.bf16.mxu0 %v1035_v43  ;;  %1408 = vmatprep.subr.bf16.mxu1 %v1037_v0  ;;  %v1091_v43 = vld [vmem:[#allocation2 + $0x5c8] sm:$0xff]  ;;  %v1093_v0 = vld [vmem:[#allocation2 + $0x5d8] sm:$0xff] }
 0x21b   :  { %1236 = vmatmul.mubr.bf16.vlgmr.msra.gmra.mrb[0].mxu0 %v2890_v36  ;;  %1400 = vmatmul.mubr.bf16.vlgmr.msra.gmra.mrb[16].mxu1 %v2890_v36  ;;  %v1049_v36 = vld [vmem:[#allocation2 + $0x478] sm:$0xff] }
 0x21c   :  { %1245 = vmatpush1.bf16.msra.mxu0 %v1034_v19  ;;  %1409 = vmatpush1.bf16.msra.mxu1 %v1036_v33  ;;  %v1090_v19 = vld [vmem:[#allocation2 + $0x5c0] sm:$0xff]  ;;  %v1092_v33 = vld [vmem:[#allocation2 + $0x5d0] sm:$0xff] }
 0x21d   :  { %1246 = vmatprep.subr.bf16.mxu0 %v1039_v7  ;;  %1410 = vmatprep.subr.bf16.mxu1 %v1041_v24  ;;  %v1095_v7 = vld [vmem:[#allocation2 + $0x5e8] sm:$0xff]  ;;  %v1097_v24 = vld [vmem:[#allocation2 + $0x5f8] sm:$0xff] }
 0x21e   :  { %1276 = vmatprep.mubr.bf16.mxu0 %v2896_v49  ;;  %1440 = vmatprep.mubr.bf16.mxu1 %v2896_v49  ;;  %v1050_v49 = vld [vmem:[#allocation2 + $0x480] sm:$0xff] }
 0x220   :  { %1247 = vmatpush1.bf16.msra.mxu0 %v1038_v8  ;;  %1411 = vmatpush1.bf16.msra.mxu1 %v1040_v9  ;;  %v1094_v8 = vld [vmem:[#allocation2 + $0x5e0] sm:$0xff]  ;;  %v1096_v9 = vld [vmem:[#allocation2 + $0x5f0] sm:$0xff] }
 0x221   :  { %1248 = vmatprep.subr.bf16.mxu0 %v1043_v20  ;;  %1412 = vmatprep.subr.bf16.mxu1 %v1045_v11  ;;  %v1099_v20 = vld [vmem:[#allocation2 + $0x608] sm:$0xff]  ;;  %v1101_v11 = vld [vmem:[#allocation2 + $0x618] sm:$0xff] }
 0x224   :  { %1249 = vmatpush1.bf16.msra.mxu0 %v1042_v17  ;;  %1413 = vmatpush1.bf16.msra.mxu1 %v1044_v13  ;;  %v1098_v17 = vld [vmem:[#allocation2 + $0x600] sm:$0xff]  ;;  %v1100_v13 = vld [vmem:[#allocation2 + $0x610] sm:$0xff] }
 0x225   :  { %1250 = vmatprep.subr.bf16.mxu0 %v1047_v14  ;;  %1414 = vmatprep.subr.bf16.mxu1 %v1049_v36  ;;  %v1103_v14 = vld [vmem:[#allocation2 + $0x628] sm:$0xff]  ;;  %v1105_v36 = vld [vmem:[#allocation2 + $0x638] sm:$0xff] }
 0x228   :  { %1251 = vmatpush1.bf16.msra.mxu0 %v1046_v15  ;;  %1415 = vmatpush1.bf16.msra.mxu1 %v1048_v16  ;;  %v1102_v15 = vld [vmem:[#allocation2 + $0x620] sm:$0xff]  ;;  %v1104_v16 = vld [vmem:[#allocation2 + $0x630] sm:$0xff] }
 0x229   :  { %1252 = vmatprep.subr.bf16.mxu0 %v1051_v18  ;;  %1416 = vmatprep.subr.bf16.mxu1 %v1053_v21  ;;  %v1107_v18 = vld [vmem:[#allocation2 + $0x648] sm:$0xff]  ;;  %v1109_v21 = vld [vmem:[#allocation2 + $0x658] sm:$0xff] }
 0x22c   :  { %1253 = vmatpush1.bf16.msra.mxu0 %v1050_v49  ;;  %1417 = vmatpush1.bf16.msra.mxu1 %v1052_v22  ;;  %v1106_v49 = vld [vmem:[#allocation2 + $0x640] sm:$0xff]  ;;  %v1108_v22 = vld [vmem:[#allocation2 + $0x650] sm:$0xff] }
 0x22d   :  { %1254 = vmatprep.subr.bf16.mxu0 %v1055_v23  ;;  %1418 = vmatprep.subr.bf16.mxu1 %v1057_v25  ;;  %v1111_v23 = vld [vmem:[#allocation2 + $0x668] sm:$0xff]  ;;  %v1110_v25 = vld [vmem:[#allocation2 + $0x660] sm:$0xff] }
 0x230   :  { %1255 = vmatpush1.bf16.msra.mxu0 %v1054_v26  ;;  %1419 = vmatpush1.bf16.msra.mxu1 %v1056_v28  ;;  %v1112_v26 = vld [vmem:[#allocation2 + $0x670] sm:$0xff]  ;;  %v1115_v28 = vld [vmem:[#allocation2 + $0x688] sm:$0xff] }
 0x231   :  { %1256 = vmatprep.subr.bf16.mxu0 %v1059_v37  ;;  %1420 = vmatprep.subr.bf16.mxu1 %v1061_v38  ;;  %v1117_v37 = vld [vmem:[#allocation2 + $0x698] sm:$0xff]  ;;  %v1116_v38 = vld [vmem:[#allocation2 + $0x690] sm:$0xff] }
 0x234   :  { %1257 = vmatpush1.bf16.msra.mxu0 %v1058_v40  ;;  %1421 = vmatpush1.bf16.msra.mxu1 %v1060_v41  ;;  %v1119_v40 = vld [vmem:[#allocation2 + $0x6a8] sm:$0xff]  ;;  %v1121_v41 = vld [vmem:[#allocation2 + $0x6b8] sm:$0xff] }
 0x235   :  { %1258 = vmatprep.subr.bf16.mxu0 %v1063_v42  ;;  %1422 = vmatprep.subr.bf16.mxu1 %v1065_v44  ;;  %v1118_v42 = vld [vmem:[#allocation2 + $0x6a0] sm:$0xff]  ;;  %v1120_v44 = vld [vmem:[#allocation2 + $0x6b0] sm:$0xff] }
 0x238   :  { %1259 = vmatpush1.bf16.msra.mxu0 %v1062_v45  ;;  %1423 = vmatpush1.bf16.msra.mxu1 %v1064_v46  ;;  %v1123_v45 = vld [vmem:[#allocation2 + $0x6c8] sm:$0xff]  ;;  %v1125_v46 = vld [vmem:[#allocation2 + $0x6d8] sm:$0xff] }
 0x239   :  { %1260 = vmatprep.subr.bf16.mxu0 %v1067_v47  ;;  %1424 = vmatprep.subr.bf16.mxu1 %v1069_v35  ;;  %v1122_v47 = vld [vmem:[#allocation2 + $0x6c0] sm:$0xff]  ;;  %v1124_v35 = vld [vmem:[#allocation2 + $0x6d0] sm:$0xff] }
 0x23c   :  { %1261 = vmatpush1.bf16.msra.mxu0 %v1066_v51  ;;  %1425 = vmatpush1.bf16.msra.mxu1 %v1068_v52  ;;  %v1127_v51 = vld [vmem:[#allocation2 + $0x6e8] sm:$0xff]  ;;  %v1129_v52 = vld [vmem:[#allocation2 + $0x6f8] sm:$0xff] }
 0x23d   :  { %1262 = vmatprep.subr.bf16.mxu0 %v1071_v53  ;;  %1426 = vmatprep.subr.bf16.mxu1 %v1073_v55  ;;  %v1126_v53 = vld [vmem:[#allocation2 + $0x6e0] sm:$0xff]  ;;  %v1128_v55 = vld [vmem:[#allocation2 + $0x6f0] sm:$0xff] }
 0x240   :  { %1263 = vmatpush1.bf16.msra.mxu0 %v1070_v57  ;;  %1427 = vmatpush1.bf16.msra.mxu1 %v1072_v59  ;;  %v1131_v57 = vld [vmem:[#allocation2 + $0x708] sm:$0xff]  ;;  %v1133_v59 = vld [vmem:[#allocation2 + $0x718] sm:$0xff] }
 0x241   :  { %1264 = vmatprep.subr.bf16.mxu0 %v1075_v60  ;;  %1428 = vmatprep.subr.bf16.mxu1 %v1077_v61  ;;  %v1130_v60 = vld [vmem:[#allocation2 + $0x700] sm:$0xff]  ;;  %v1132_v61 = vld [vmem:[#allocation2 + $0x710] sm:$0xff] }
 0x244   :  { %1265 = vmatpush1.bf16.msra.mxu0 %v1074_v1  ;;  %1429 = vmatpush1.bf16.msra.mxu1 %v1076_v32  ;;  %v1135_v1 = vld [vmem:[#allocation2 + $0x728] sm:$0xff]  ;;  %v1137_v32 = vld [vmem:[#allocation2 + $0x738] sm:$0xff] }
 0x245   :  { %1266 = vmatprep.subr.bf16.mxu0 %v1079_v34  ;;  %1430 = vmatprep.subr.bf16.mxu1 %v1081_v10  ;;  %v1134_v34 = vld [vmem:[#allocation2 + $0x720] sm:$0xff]  ;;  %v1136_v10 = vld [vmem:[#allocation2 + $0x730] sm:$0xff] }
 0x248   :  { %1267 = vmatpush1.bf16.msra.mxu0 %v1078_v12  ;;  %1431 = vmatpush1.bf16.msra.mxu1 %v1080_v62  ;;  %v1139_v12 = vld [vmem:[#allocation2 + $0x748] sm:$0xff]  ;;  %v1141_v62 = vld [vmem:[#allocation2 + $0x758] sm:$0xff] }
 0x249   :  { %1268 = vmatprep.subr.bf16.mxu0 %v1083_v2  ;;  %1432 = vmatprep.subr.bf16.mxu1 %v1085_v56  ;;  %v1138_v2 = vld [vmem:[#allocation2 + $0x740] sm:$0xff]  ;;  %v1140_v56 = vld [vmem:[#allocation2 + $0x750] sm:$0xff] }
 0x24c   :  { %1269 = vmatpush1.bf16.msra.mxu0 %v1082_v58  ;;  %1433 = vmatpush1.bf16.msra.mxu1 %v1084_v4  ;;  %v1143_v58 = vld [vmem:[#allocation2 + $0x768] sm:$0xff]  ;;  %v1145_v4 = vld [vmem:[#allocation2 + $0x778] sm:$0xff] }
 0x24d   :  { %1270 = vmatprep.subr.bf16.mxu0 %v1087_v6  ;;  %1434 = vmatprep.subr.bf16.mxu1 %v1089_v3  ;;  %v1142_v6 = vld [vmem:[#allocation2 + $0x760] sm:$0xff]  ;;  %v1144_v3 = vld [vmem:[#allocation2 + $0x770] sm:$0xff] }
 0x250   :  { %1271 = vmatpush1.bf16.msra.mxu0 %v1086_v5  ;;  %1435 = vmatpush1.bf16.msra.mxu1 %v1088_v39  ;;  %v1147_v5 = vld [vmem:[#allocation2 + $0x788] sm:$0xff]  ;;  %v1149_v39 = vld [vmem:[#allocation2 + $0x798] sm:$0xff] }
 0x251   :  { %1272 = vmatprep.subr.bf16.mxu0 %v1091_v43  ;;  %1436 = vmatprep.subr.bf16.mxu1 %v1093_v0  ;;  %v1146_v43 = vld [vmem:[#allocation2 + $0x780] sm:$0xff]  ;;  %v1148_v0 = vld [vmem:[#allocation2 + $0x790] sm:$0xff] }
 0x254   :  { %1273 = vmatpush1.bf16.msra.mxu0 %v1090_v19  ;;  %1437 = vmatpush1.bf16.msra.mxu1 %v1092_v33  ;;  %v1151_v19 = vld [vmem:[#allocation2 + $0x7a8] sm:$0xff]  ;;  %v1153_v33 = vld [vmem:[#allocation2 + $0x7b8] sm:$0xff] }
 0x255   :  { %1274 = vmatprep.subr.bf16.mxu0 %v1095_v7  ;;  %1438 = vmatprep.subr.bf16.mxu1 %v1097_v24  ;;  %v1150_v7 = vld [vmem:[#allocation2 + $0x7a0] sm:$0xff]  ;;  %v1152_v24 = vld [vmem:[#allocation2 + $0x7b0] sm:$0xff] }
 0x258   :  { %1275 = vmatpush1.bf16.msra.mxu0 %v1094_v8  ;;  %1439 = vmatpush1.bf16.msra.mxu1 %v1096_v9  ;;  %v1155_v8 = vld [vmem:[#allocation2 + $0x7c8] sm:$0xff]  ;;  %v1157_v9 = vld [vmem:[#allocation2 + $0x7d8] sm:$0xff] }
 0x259   :  { %1285 = vmatprep.subr.bf16.mxu0 %v1099_v20  ;;  %1449 = vmatprep.subr.bf16.mxu1 %v1101_v11  ;;  %v1154_v20 = vld [vmem:[#allocation2 + $0x7c0] sm:$0xff]  ;;  %v1156_v11 = vld [vmem:[#allocation2 + $0x7d0] sm:$0xff] }
 0x25b   :  { %1277 = vmatmul.mubr.bf16.vlgmr.msra.gmra.mrb[0].mxu0 %v2894_v48  ;;  %1441 = vmatmul.mubr.bf16.vlgmr.msra.gmra.mrb[16].mxu1 %v2894_v48  ;;  %v1113_v48 = vld [vmem:[#allocation2 + $0x678] sm:$0xff] }
 0x25c   :  { %1286 = vmatpush1.bf16.msra.mxu0 %v1098_v17  ;;  %1450 = vmatpush1.bf16.msra.mxu1 %v1100_v13  ;;  %v1159_v17 = vld [vmem:[#allocation2 + $0x7e8] sm:$0xff]  ;;  %v1161_v13 = vld [vmem:[#allocation2 + $0x7f8] sm:$0xff] }
 0x25d   :  { %1287 = vmatprep.subr.bf16.mxu0 %v1103_v14  ;;  %1451 = vmatprep.subr.bf16.mxu1 %v1105_v36  ;;  %v1158_v14 = vld [vmem:[#allocation2 + $0x7e0] sm:$0xff]  ;;  %v1160_v36 = vld [vmem:[#allocation2 + $0x7f0] sm:$0xff] }
 0x25e   :  { %1317 = vmatprep.mubr.bf16.mxu0 %v2900_v54  ;;  %1481 = vmatprep.mubr.bf16.mxu1 %v2900_v54  ;;  %v1114_v54 = vld [vmem:[#allocation2 + $0x680] sm:$0xff] }
 0x260   :  { %1288 = vmatpush1.bf16.msra.mxu0 %v1102_v15  ;;  %1452 = vmatpush1.bf16.msra.mxu1 %v1104_v16 }
 0x261   :  { %1289 = vmatprep.subr.bf16.mxu0 %v1107_v18  ;;  %1453 = vmatprep.subr.bf16.mxu1 %v1109_v21 }
 0x264   :  { %1290 = vmatpush1.bf16.msra.mxu0 %v1106_v49  ;;  %1454 = vmatpush1.bf16.msra.mxu1 %v1108_v22 }
 0x265   :  { %1291 = vmatprep.subr.bf16.mxu0 %v1111_v23  ;;  %1455 = vmatprep.subr.bf16.mxu1 %v1113_v48 }
 0x268   :  { %1292 = vmatpush1.bf16.msra.mxu0 %v1110_v25  ;;  %1456 = vmatpush1.bf16.msra.mxu1 %v1112_v26 }
 0x269   :  { %1293 = vmatprep.subr.bf16.mxu0 %v1115_v28  ;;  %1457 = vmatprep.subr.bf16.mxu1 %v1117_v37 }
 0x26c   :  { %1294 = vmatpush1.bf16.msra.mxu0 %v1114_v54  ;;  %1458 = vmatpush1.bf16.msra.mxu1 %v1116_v38 }
 0x26d   :  { %1295 = vmatprep.subr.bf16.mxu0 %v1119_v40  ;;  %1459 = vmatprep.subr.bf16.mxu1 %v1121_v41 }
 0x270   :  { %1296 = vmatpush1.bf16.msra.mxu0 %v1118_v42  ;;  %1460 = vmatpush1.bf16.msra.mxu1 %v1120_v44 }
 0x271   :  { %1297 = vmatprep.subr.bf16.mxu0 %v1123_v45  ;;  %1461 = vmatprep.subr.bf16.mxu1 %v1125_v46 }
 0x274   :  { %1298 = vmatpush1.bf16.msra.mxu0 %v1122_v47  ;;  %1462 = vmatpush1.bf16.msra.mxu1 %v1124_v35 }
 0x275   :  { %1299 = vmatprep.subr.bf16.mxu0 %v1127_v51  ;;  %1463 = vmatprep.subr.bf16.mxu1 %v1129_v52 }
 0x278   :  { %1300 = vmatpush1.bf16.msra.mxu0 %v1126_v53  ;;  %1464 = vmatpush1.bf16.msra.mxu1 %v1128_v55 }
 0x279   :  { %1301 = vmatprep.subr.bf16.mxu0 %v1131_v57  ;;  %1465 = vmatprep.subr.bf16.mxu1 %v1133_v59 }
 0x27c   :  { %1302 = vmatpush1.bf16.msra.mxu0 %v1130_v60  ;;  %1466 = vmatpush1.bf16.msra.mxu1 %v1132_v61 }
 0x27d   :  { %1303 = vmatprep.subr.bf16.mxu0 %v1135_v1  ;;  %1467 = vmatprep.subr.bf16.mxu1 %v1137_v32 }
 0x280   :  { %1304 = vmatpush1.bf16.msra.mxu0 %v1134_v34  ;;  %1468 = vmatpush1.bf16.msra.mxu1 %v1136_v10 }
 0x281   :  { %1305 = vmatprep.subr.bf16.mxu0 %v1139_v12  ;;  %1469 = vmatprep.subr.bf16.mxu1 %v1141_v62 }
 0x284   :  { %1306 = vmatpush1.bf16.msra.mxu0 %v1138_v2  ;;  %1470 = vmatpush1.bf16.msra.mxu1 %v1140_v56 }
 0x285   :  { %1307 = vmatprep.subr.bf16.mxu0 %v1143_v58  ;;  %1471 = vmatprep.subr.bf16.mxu1 %v1145_v4 }
 0x288   :  { %1308 = vmatpush1.bf16.msra.mxu0 %v1142_v6  ;;  %1472 = vmatpush1.bf16.msra.mxu1 %v1144_v3 }
 0x289   :  { %1309 = vmatprep.subr.bf16.mxu0 %v1147_v5  ;;  %1473 = vmatprep.subr.bf16.mxu1 %v1149_v39 }
 0x28c   :  { %1310 = vmatpush1.bf16.msra.mxu0 %v1146_v43  ;;  %1474 = vmatpush1.bf16.msra.mxu1 %v1148_v0 }
 0x28d   :  { %1311 = vmatprep.subr.bf16.mxu0 %v1151_v19  ;;  %1475 = vmatprep.subr.bf16.mxu1 %v1153_v33 }
 0x290   :  { %1312 = vmatpush1.bf16.msra.mxu0 %v1150_v7  ;;  %1476 = vmatpush1.bf16.msra.mxu1 %v1152_v24 }
 0x291   :  { %1313 = vmatprep.subr.bf16.mxu0 %v1155_v8  ;;  %1477 = vmatprep.subr.bf16.mxu1 %v1157_v9 }
 0x294   :  { %1314 = vmatpush1.bf16.msra.mxu0 %v1154_v20  ;;  %1478 = vmatpush1.bf16.msra.mxu1 %v1156_v11 }
 0x295   :  { %1315 = vmatprep.subr.bf16.mxu0 %v1159_v17  ;;  %1479 = vmatprep.subr.bf16.mxu1 %v1161_v13 }
 0x298   :  { %1316 = vmatpush1.bf16.msra.mxu0 %v1158_v14  ;;  %1480 = vmatpush1.bf16.msra.mxu1 %v1160_v36 }
 0x29b   :  { %1318 = vmatmul.mubr.bf16.vlgmr.msra.gmra.mrb[0].mxu0 %v2898_v50  ;;  %1482 = vmatmul.mubr.bf16.vlgmr.msra.gmra.mrb[16].mxu1 %v2898_v50 }
 0x36e   :  { %v2916_v15 = vpop.f32.mrb[0].mxu0  ;;  %v2918_v16 = vpop.f32.mrb[16].mxu1 }
 0x36f   :  { %v1490_v18 = vrot.slane %v2916_v15, 4  ;;  %v1514_v21 = vmul.f32 %v2916_v15, %v2916_v15  ;;  %v1502_v49 = vrot.slane %v2918_v16, 4  ;;  %v1516_v22 = vmul.f32 %v2918_v16, %v2918_v16  ;;  %v2926_v23 = vpop.f32.mrb[1].mxu0  ;;  %v2928_v48 = vpop.f32.mrb[17].mxu1 }
 0x370   :  { %v1496_v50 = vrot.slane %v2926_v23, 4  ;;  %v1515_v25 = vmul.f32 %v2926_v23, %v2926_v23  ;;  %v1508_v26 = vrot.slane %v2928_v48, 4  ;;  %v1517_v28 = vmul.f32 %v2928_v48, %v2928_v48  ;;  %v1323_v37 = vpop.f32.mrb[2].mxu0  ;;  %v1487_v54 = vpop.f32.mrb[18].mxu1 }
 0x371   :  { %v1491_v38 = vadd.f32 %v1490_v18, %v2916_v15  ;;  %v1518_v40 = vrot.slane %v1514_v21, 4  ;;  %v1503_v41 = vadd.f32 %v1502_v49, %v2918_v16  ;;  %v1530_v42 = vrot.slane %v1516_v22, 4  ;;  %v1324_v44 = vpop.f32.mrb[3].mxu0  ;;  %v1488_v45 = vpop.f32.mrb[19].mxu1 }
 0x372   :  { %v1497_v46 = vadd.f32 %v1496_v50, %v2926_v23  ;;  %v1524_v47 = vrot.slane %v1515_v25, 4  ;;  %v1509_v35 = vadd.f32 %v1508_v26, %v2928_v48  ;;  %v1536_v51 = vrot.slane %v1517_v28, 4 }
 0x373   :  { %v1492_v52 = vrot.slane %v1491_v38, 2  ;;  %v1519_v53 = vadd.f32 %v1518_v40, %v1514_v21  ;;  %v1504_v55 = vrot.slane %v1503_v41, 2  ;;  %v1531_v57 = vadd.f32 %v1530_v42, %v1516_v22 }
 0x374   :  { %v1498_v59 = vrot.slane %v1497_v46, 2  ;;  %v1525_v60 = vadd.f32 %v1524_v47, %v1515_v25  ;;  %v1510_v61 = vrot.slane %v1509_v35, 2  ;;  %v1537_v1 = vadd.f32 %v1536_v51, %v1517_v28 }
 0x375   :  { %v1493_v32 = vadd.f32 %v1492_v52, %v1491_v38  ;;  %v1520_v34 = vrot.slane %v1519_v53, 2  ;;  %v1505_v10 = vadd.f32 %v1504_v55, %v1503_v41  ;;  %v1532_v12 = vrot.slane %v1531_v57, 2 }
 0x376   :  { %v1499_v62 = vadd.f32 %v1498_v59, %v1497_v46  ;;  %v1526_v2 = vrot.slane %v1525_v60, 2  ;;  %v1511_v56 = vadd.f32 %v1510_v61, %v1509_v35  ;;  %v1538_v58 = vrot.slane %v1537_v1, 2 }
 0x377   :  { %v1494_v4 = vrot.slane %v1493_v32, 1  ;;  %v1521_v6 = vadd.f32 %v1520_v34, %v1519_v53  ;;  %v1506_v3 = vrot.slane %v1505_v10, 1  ;;  %v1533_v5 = vadd.f32 %v1532_v12, %v1531_v57 }
 0x378   :  { %v1500_v39 = vrot.slane %v1499_v62, 1  ;;  %v1527_v43 = vadd.f32 %v1526_v2, %v1525_v60  ;;  %v1512_v0 = vrot.slane %v1511_v56, 1  ;;  %v1539_v19 = vadd.f32 %v1538_v58, %v1537_v1 }
 0x379   :  { %v1495_v33 = vadd.f32 %v1494_v4, %v1493_v32  ;;  %v1522_v7 = vrot.slane %v1521_v6, 1  ;;  %v1507_v24 = vadd.f32 %v1506_v3, %v1505_v10  ;;  %v1534_v8 = vrot.slane %v1533_v5, 1  ;;  %v1558_v10 = vld [vmem:[%s3039_s5] sm:$0xf] }
 0x37a   :  { %v1501_v9 = vadd.f32 %v1500_v39, %v1499_v62  ;;  %v1528_v20 = vrot.slane %v1527_v43, 1  ;;  %v1513_v11 = vadd.f32 %v1512_v0, %v1511_v56  ;;  %v1540_v17 = vrot.slane %v1539_v19, 1 }
 0x37b   :  { %v1523_v13 = vadd.f32 %v1522_v7, %v1521_v6  ;;  %v1542_v14 = vmul.f32 0.125, %v1495_v33  ;;  %v1535_v36 = vadd.f32 %v1534_v8, %v1533_v5  ;;  %v1544_v18 = vmul.f32 0.125, %v1507_v24 }
 0x37c   :  { %v1529_v21 = vadd.f32 %v1528_v20, %v1527_v43  ;;  %v1543_v49 = vmul.f32 0.125, %v1501_v9  ;;  %v1541_v22 = vadd.f32 %v1540_v17, %v1539_v19  ;;  %v1545_v50 = vmul.f32 0.125, %v1513_v11  ;;  %v1597_v11 = vld [vmem:[%s3040_s6] sm:$0xf] }
 0x37d   :  { %v1546_v25 = vmul.f32 0.125, %v1523_v13  ;;  %v1550_v26 = vmul.f32 %v1542_v14, %v1542_v14  ;;  %v1548_v28 = vmul.f32 0.125, %v1535_v36  ;;  %v1552_v37 = vmul.f32 %v1544_v18, %v1544_v18 }
 0x37e   :  { %v1547_v54 = vmul.f32 0.125, %v1529_v21  ;;  %v1551_v38 = vmul.f32 %v1543_v49, %v1543_v49  ;;  %v1549_v40 = vmul.f32 0.125, %v1541_v22  ;;  %v1553_v41 = vmul.f32 %v1545_v50, %v1545_v50 }
 0x37f   :  { %v1554_v42 = vsub.f32 %v1546_v25, %v1550_v26  ;;  %v1556_v44 = vsub.f32 %v1548_v28, %v1552_v37 }
 0x380   :  { %v1555_v45 = vsub.f32 %v1547_v54, %v1551_v38  ;;  %v1557_v46 = vsub.f32 %v1549_v40, %v1553_v41 }
 0x381   :  { %v1559_v47 = vadd.f32 1e-05, %v1554_v42  ;;  %v1561_v35 = vadd.f32 1e-05, %v1556_v44 }
 0x382   :  { %v1560_v51 = vadd.f32 1e-05, %v1555_v45  ;;  %v1562_v52 = vadd.f32 1e-05, %v1557_v46 }
 0x383   :  { %2481 = vrsqrt.f32 %v1559_v47 }
 0x384   :  { %2483 = vrsqrt.f32 %v1561_v35 }
 0x385   :  { %2485 = vrsqrt.f32 %v1560_v51 }
 0x386   :  { %2487 = vrsqrt.f32 %v1562_v52 }
 0x38d   :  { %v2482_v53 = vpop.eup %2481 }
 0x38e   :  { %v2484_v55 = vpop.eup %2483 }
 0x38f   :  { %v2486_v57 = vpop.eup %2485 }
 0x390   :  { %v2488_v59 = vpop.eup %2487  ;;  %v1571_v60 = vcombine.low %v2482_v53, %v2486_v57 }
 0x391   :  { %v1572_v61 = vcombine.low %v2484_v55, %v2488_v59 }
 0x392   :  { %v1579_v1 = vrot.slane %v1571_v60, %v2812_v63 }
 0x393   :  { %v1586_v32 = vrot.slane %v1572_v61, %v2812_v63 }
 0x395   :  { %v1587_v34 = vcombine.low %v1579_v1, %v1586_v32 }
 0x397   :  { %v1594_v12 = vrot.slane %v1587_v34, %v2812_v63 }
 0x399   :  { %v1596_v62 = vmul.f32 %v1594_v12, %v1558_v10 }
 0x39b   :  { %v1602_v2 = vrot.slane %v1596_v62, %v2842_v27  ;;  %v1606_v56 = vrot.slane %v1596_v62, %v2845_v29  ;;  %v1610_v58 = vrot.slane %v1596_v62, %v2848_v30  ;;  %v1614_v4 = vrot.slane %v1596_v62, %v2851_v31 }
 0x39d   :  { %v1619_v6 = vmul.f32 %v1602_v2, %v1542_v14  ;;  %v1620_v3 = vmul.f32 %v1606_v56, %v1543_v49  ;;  %v1621_v5 = vmul.f32 %v1610_v58, %v1544_v18  ;;  %v1622_v39 = vmul.f32 %v1614_v4, %v1545_v50 }
 0x39e   :  { %v1653_v43 = vmul.f32 %v1602_v2, %v2916_v15  ;;  %v1654_v0 = vmul.f32 %v1606_v56, %v2926_v23  ;;  %v1655_v19 = vmul.f32 %v1610_v58, %v2918_v16  ;;  %v1656_v33 = vmul.f32 %v1614_v4, %v2928_v48 }
 0x39f   :  { %v1627_v7 = vcombine.low %v1619_v6, %v1620_v3  ;;  %v1628_v24 = vcombine.low %v1621_v5, %v1622_v39 }
 0x3a1   :  { %v1635_v8 = vrot.slane %v1627_v7, %v2812_v63  ;;  %v1642_v9 = vrot.slane %v1628_v24, %v2812_v63 }
 0x3a3   :  { %v1643_v20 = vcombine.low %v1635_v8, %v1642_v9 }
 0x3a5   :  { %v1650_v17 = vrot.slane %v1643_v20, %v2812_v63 }
 0x3a7   :  { %v1652_v15 = vsub.f32 %v1597_v11, %v1650_v17 }
 0x3a9   :  { %v1661_v23 = vrot.slane %v1652_v15, %v2842_v27  ;;  %v1665_v16 = vrot.slane %v1652_v15, %v2845_v29  ;;  %v1669_v48 = vrot.slane %v1652_v15, %v2848_v30  ;;  %v1673_v13 = vrot.slane %v1652_v15, %v2851_v31 }
 0x3ab   :  { %v1678_v14 = vadd.f32 %v1661_v23, %v1653_v43  ;;  %v1679_v36 = vadd.f32 %v1665_v16, %v1654_v0  ;;  %v1680_v18 = vadd.f32 %v1669_v48, %v1655_v19  ;;  %v1681_v21 = vadd.f32 %v1673_v13, %v1656_v33 }
 0x3ad   :  { %v1682_v49 = vmax.f32 %v1678_v14, 0.0  ;;  %v1683_v22 = vmax.f32 %v1679_v36, 0.0  ;;  %v1684_v50 = vmax.f32 %v1680_v18, 0.0  ;;  %v1685_v25 = vmax.f32 %v1681_v21, 0.0 }
 0x3af   :  { %v2964_v26 = vpack.c.bf16 %v1682_v49, %v1682_v49  ;;  %v1687_v28 = vpack.c.bf16 %v1683_v22, %v1683_v22  ;;  %v2966_v37 = vpack.c.bf16 %v1684_v50, %v1684_v50  ;;  %v2968_v54 = vpack.c.bf16 %v1685_v25, %v1685_v25 }
 0x3b0   :  { %2591 = dma.done.wait [#allocation4 + $0x1], 8192 }
 0x3b1   :  { %2592 = vsyncadd [#allocation4 + $0x1], 4294959104  ;;  %1790 = vmatprep.mubr.bf16.mxu0 %v1687_v28  ;;  %v1695_v30 = vld [vmem:[#allocation3 + $0x8] sm:$0xff]  ;;  %v1694_v31 = vld [vmem:[#allocation3] sm:$0xff]  ;;  %vm2613_vm1 = vmmov 0  }
 0x3b2   :  { %v1697_v38 = vld [vmem:[#allocation3 + $0x18] sm:$0xff]  ;;  %1758 = vmatprep.subr.bf16.mxu0 %v1695_v30  ;;  %v1696_v40 = vld [vmem:[#allocation3 + $0x10] sm:$0xff]  ;;  %v1699_v41 = vld [vmem:[#allocation3 + $0x28] sm:$0xff] }
 0x3b3   :  { %1759 = vmatpush1.bf16.msra.mxu0 %v1694_v31  ;;  %v1698_v42 = vld [vmem:[#allocation3 + $0x20] sm:$0xff]  ;;  %v1701_v44 = vld [vmem:[#allocation3 + $0x38] sm:$0xff]  ;;  %v1700_v45 = vld [vmem:[#allocation3 + $0x30] sm:$0xff] }
 0x3b4   :  { %1760 = vmatprep.subr.bf16.mxu0 %v1697_v38  ;;  %v1703_v46 = vld [vmem:[#allocation3 + $0x48] sm:$0xff]  ;;  %v1702_v47 = vld [vmem:[#allocation3 + $0x40] sm:$0xff]  ;;  %v1705_v35 = vld [vmem:[#allocation3 + $0x58] sm:$0xff] }
 0x3b5   :  { %v1704_v51 = vld [vmem:[#allocation3 + $0x50] sm:$0xff]  ;;  %v1707_v52 = vld [vmem:[#allocation3 + $0x68] sm:$0xff]  ;;  %v1706_v53 = vld [vmem:[#allocation3 + $0x60] sm:$0xff] }
 0x3b6   :  { %v1709_v55 = vld [vmem:[#allocation3 + $0x78] sm:$0xff]  ;;  %v1708_v57 = vld [vmem:[#allocation3 + $0x70] sm:$0xff]  ;;  %v1711_v59 = vld [vmem:[#allocation3 + $0x88] sm:$0xff] }
 0x3b7   :  { %1761 = vmatpush1.bf16.msra.mxu0 %v1696_v40  ;;  %v1710_v60 = vld [vmem:[#allocation3 + $0x80] sm:$0xff]  ;;  %v1713_v61 = vld [vmem:[#allocation3 + $0x98] sm:$0xff]  ;;  %v1712_v1 = vld [vmem:[#allocation3 + $0x90] sm:$0xff] }
 0x3b8   :  { %1762 = vmatprep.subr.bf16.mxu0 %v1699_v41  ;;  %v1715_v32 = vld [vmem:[#allocation3 + $0xa8] sm:$0xff]  ;;  %v1714_v34 = vld [vmem:[#allocation3 + $0xa0] sm:$0xff]  ;;  %v1717_v10 = vld [vmem:[#allocation3 + $0xb8] sm:$0xff] }
 0x3b9   :  { %v1716_v12 = vld [vmem:[#allocation3 + $0xb0] sm:$0xff]  ;;  %v1719_v62 = vld [vmem:[#allocation3 + $0xc8] sm:$0xff]  ;;  %v1718_v2 = vld [vmem:[#allocation3 + $0xc0] sm:$0xff] }
 0x3ba   :  { %v1721_v56 = vld [vmem:[#allocation3 + $0xd8] sm:$0xff]  ;;  %v1720_v58 = vld [vmem:[#allocation3 + $0xd0] sm:$0xff]  ;;  %v1723_v4 = vld [vmem:[#allocation3 + $0xe8] sm:$0xff] }
 0x3bb   :  { %1763 = vmatpush1.bf16.msra.mxu0 %v1698_v42  ;;  %v1722_v6 = vld [vmem:[#allocation3 + $0xe0] sm:$0xff]  ;;  %v1725_v3 = vld [vmem:[#allocation3 + $0xf8] sm:$0xff]  ;;  %v1724_v5 = vld [vmem:[#allocation3 + $0xf0] sm:$0xff] }
 0x3bc   :  { %1764 = vmatprep.subr.bf16.mxu0 %v1701_v44  ;;  %v1727_v39 = vld [vmem:[#allocation3 + $0x108] sm:$0xff]  ;;  %v1726_v43 = vld [vmem:[#allocation3 + $0x100] sm:$0xff]  ;;  %v1729_v0 = vld [vmem:[#allocation3 + $0x118] sm:$0xff] }
 0x3bd   :  { %v1728_v19 = vld [vmem:[#allocation3 + $0x110] sm:$0xff]  ;;  %v1731_v33 = vld [vmem:[#allocation3 + $0x128] sm:$0xff]  ;;  %v1730_v7 = vld [vmem:[#allocation3 + $0x120] sm:$0xff] }
 0x3be   :  { %v1733_v24 = vld [vmem:[#allocation3 + $0x138] sm:$0xff]  ;;  %v1732_v8 = vld [vmem:[#allocation3 + $0x130] sm:$0xff]  ;;  %v1735_v9 = vld [vmem:[#allocation3 + $0x148] sm:$0xff] }
 0x3bf   :  { %1765 = vmatpush1.bf16.msra.mxu0 %v1700_v45  ;;  %v1734_v20 = vld [vmem:[#allocation3 + $0x140] sm:$0xff]  ;;  %v1737_v11 = vld [vmem:[#allocation3 + $0x158] sm:$0xff]  ;;  %v1736_v17 = vld [vmem:[#allocation3 + $0x150] sm:$0xff] }
 0x3c0   :  { %1766 = vmatprep.subr.bf16.mxu0 %v1703_v46  ;;  %v1739_v15 = vld [vmem:[#allocation3 + $0x168] sm:$0xff]  ;;  %v1738_v23 = vld [vmem:[#allocation3 + $0x160] sm:$0xff]  ;;  %v1741_v16 = vld [vmem:[#allocation3 + $0x178] sm:$0xff] }
 0x3c1   :  { %v1740_v48 = vld [vmem:[#allocation3 + $0x170] sm:$0xff]  ;;  %v1743_v13 = vld [vmem:[#allocation3 + $0x188] sm:$0xff]  ;;  %v1742_v14 = vld [vmem:[#allocation3 + $0x180] sm:$0xff] }
 0x3c2   :  { %v1745_v36 = vld [vmem:[#allocation3 + $0x198] sm:$0xff]  ;;  %v1744_v18 = vld [vmem:[#allocation3 + $0x190] sm:$0xff]  ;;  %v1747_v21 = vld [vmem:[#allocation3 + $0x1a8] sm:$0xff] }
 0x3c3   :  { %1767 = vmatpush1.bf16.msra.mxu0 %v1702_v47  ;;  %v1746_v49 = vld [vmem:[#allocation3 + $0x1a0] sm:$0xff]  ;;  %v1749_v22 = vld [vmem:[#allocation3 + $0x1b8] sm:$0xff]  ;;  %v1748_v50 = vld [vmem:[#allocation3 + $0x1b0] sm:$0xff] }
 0x3c4   :  { %1768 = vmatprep.subr.bf16.mxu0 %v1705_v35  ;;  %v1751_v25 = vld [vmem:[#allocation3 + $0x1c8] sm:$0xff]  ;;  %v1753_v28 = vld [vmem:[#allocation3 + $0x1d8] sm:$0xff]  ;;  %v1754_v31 = vld [vmem:[#allocation3 + $0x1e0] sm:$0xff] }
 0x3c5   :  { %v1755_v30 = vld [vmem:[#allocation3 + $0x1e8] sm:$0xff]  ;;  %v1757_v38 = vld [vmem:[#allocation3 + $0x1f8] sm:$0xff]  ;;  %v1756_v40 = vld [vmem:[#allocation3 + $0x1f0] sm:$0xff] }
 0x3c6   :  { %v2489_v41 = vld [vmem:[#allocation8 + $0x40] sm:$0xff]   ;;  %v2491_v44 = vld [vmem:[#allocation8 + $0x48] sm:$0xff]   ;;  %v2493_v46 = vld [vmem:[#allocation8 + $0x50] sm:$0xff]  }
 0x3c7   :  { %1769 = vmatpush1.bf16.msra.mxu0 %v1704_v51  ;;  %v2490_v42 = vld [vmem:[#allocation8] sm:$0xff]   ;;  %2366 = vmatprep.subr.bf16.mxu1 %v2489_v41  ;;  %v2492_v45 = vld [vmem:[#allocation8 + $0x8] sm:$0xff]   ;;  %v2494_v47 = vld [vmem:[#allocation8 + $0x10] sm:$0xff]  }
 0x3c8   :  { %1770 = vmatprep.subr.bf16.mxu0 %v1707_v52  ;;  %2367 = vmatpush3.bf16.msra.mxu1 %v2490_v42  ;;  %v2495_v35 = vld [vmem:[#allocation8 + $0x58] sm:$0xff]   ;;  %v2497_v52 = vld [vmem:[#allocation8 + $0x60] sm:$0xff]  }
 0x3c9   :  { %2368 = vmatprep.subr.bf16.mxu1 %v2491_v44  ;;  %v2496_v51 = vld [vmem:[#allocation8 + $0x18] sm:$0xff]  }
 0x3cb   :  { %1771 = vmatpush1.bf16.msra.mxu0 %v1706_v53  ;;  %v2498_v53 = vld [vmem:[#allocation8 + $0x20] sm:$0xff]  }
 0x3cc   :  { %1772 = vmatprep.subr.bf16.mxu0 %v1709_v55  ;;  %2369 = vmatpush3.bf16.msra.mxu1 %v2492_v45  ;;  %v2500_v55 = vld [vmem:[#allocation8 + $0x28] sm:$0xff]  }
 0x3cd   :  { %2370 = vmatprep.subr.bf16.mxu1 %v2493_v46 }
 0x3cf   :  { %1773 = vmatpush1.bf16.msra.mxu0 %v1708_v57  ;;  %v2501_v57 = vld [vmem:[#allocation8 + $0x70] sm:$0xff]  }
 0x3d0   :  { %1774 = vmatprep.subr.bf16.mxu0 %v1711_v59  ;;  %2371 = vmatpush3.bf16.msra.mxu1 %v2494_v47  ;;  %v2502_v59 = vld [vmem:[#allocation8 + $0x30] sm:$0xff]  }
 0x3d1   :  { %2372 = vmatprep.subr.bf16.mxu1 %v2495_v35 }
 0x3d3   :  { %1775 = vmatpush1.bf16.msra.mxu0 %v1710_v60  ;;  %v2503_v60 = vld [vmem:[#allocation8 + $0x78] sm:$0xff]  }
 0x3d4   :  { %1776 = vmatprep.subr.bf16.mxu0 %v1713_v61  ;;  %2373 = vmatpush3.bf16.msra.mxu1 %v2496_v51  ;;  %v2504_v61 = vld [vmem:[#allocation8 + $0x38] sm:$0xff]  }
 0x3d5   :  { %2374 = vmatprep.subr.bf16.mxu1 %v2497_v52 }
 0x3d7   :  { %1777 = vmatpush1.bf16.msra.mxu0 %v1712_v1 }
 0x3d8   :  { %1778 = vmatprep.subr.bf16.mxu0 %v1715_v32  ;;  %2375 = vmatpush3.bf16.msra.mxu1 %v2498_v53 }
 0x3db   :  { %1779 = vmatpush1.bf16.msra.mxu0 %v1714_v34 }
 0x3dc   :  { %1780 = vmatprep.subr.bf16.mxu0 %v1717_v10 }
 0x3df   :  { %1781 = vmatpush1.bf16.msra.mxu0 %v1716_v12 }
 0x3e0   :  { %1782 = vmatprep.subr.bf16.mxu0 %v1719_v62 }
 0x3e3   :  { %1783 = vmatpush1.bf16.msra.mxu0 %v1718_v2 }
 0x3e4   :  { %1784 = vmatprep.subr.bf16.mxu0 %v1721_v56 }
 0x3e7   :  { %1785 = vmatpush1.bf16.msra.mxu0 %v1720_v58 }
 0x3e8   :  { %1786 = vmatprep.subr.bf16.mxu0 %v1723_v4 }
 0x3eb   :  { %1787 = vmatpush1.bf16.msra.mxu0 %v1722_v6 }
 0x3ec   :  { %1788 = vmatprep.subr.bf16.mxu0 %v1725_v3 }
 0x3ef   :  { %1789 = vmatpush1.bf16.msra.mxu0 %v1724_v5 }
 0x3f0   :  { %1799 = vmatprep.subr.bf16.mxu0 %v1727_v39 }
 0x3f2   :  { %1791 = vmatmul.mubr.bf16.vlgmr.msra.gmra.mrb[4].mxu0 %v2964_v26  ;;  %v1750_v26 = vld [vmem:[#allocation3 + $0x1c0] sm:$0xff] }
 0x3f3   :  { %1800 = vmatpush1.bf16.msra.mxu0 %v1726_v43  ;;  %1831 = vmatprep.mubr.bf16.mxu0 %v2968_v54  ;;  %v1752_v54 = vld [vmem:[#allocation3 + $0x1d0] sm:$0xff] }
 0x3f4   :  { %1801 = vmatprep.subr.bf16.mxu0 %v1729_v0 }
 0x3f7   :  { %1802 = vmatpush1.bf16.msra.mxu0 %v1728_v19 }
 0x3f8   :  { %1803 = vmatprep.subr.bf16.mxu0 %v1731_v33 }
 0x3fb   :  { %1804 = vmatpush1.bf16.msra.mxu0 %v1730_v7 }
 0x3fc   :  { %1805 = vmatprep.subr.bf16.mxu0 %v1733_v24 }
 0x3ff   :  { %1806 = vmatpush1.bf16.msra.mxu0 %v1732_v8 }
 0x400   :  { %1807 = vmatprep.subr.bf16.mxu0 %v1735_v9 }
 0x403   :  { %1808 = vmatpush1.bf16.msra.mxu0 %v1734_v20 }
 0x404   :  { %1809 = vmatprep.subr.bf16.mxu0 %v1737_v11 }
 0x407   :  { %1810 = vmatpush1.bf16.msra.mxu0 %v1736_v17 }
 0x408   :  { %1811 = vmatprep.subr.bf16.mxu0 %v1739_v15 }
 0x40b   :  { %1812 = vmatpush1.bf16.msra.mxu0 %v1738_v23 }
 0x40c   :  { %1813 = vmatprep.subr.bf16.mxu0 %v1741_v16 }
 0x40f   :  { %1814 = vmatpush1.bf16.msra.mxu0 %v1740_v48 }
 0x410   :  { %1815 = vmatprep.subr.bf16.mxu0 %v1743_v13 }
 0x413   :  { %1816 = vmatpush1.bf16.msra.mxu0 %v1742_v14 }
 0x414   :  { %1817 = vmatprep.subr.bf16.mxu0 %v1745_v36 }
 0x417   :  { %1818 = vmatpush1.bf16.msra.mxu0 %v1744_v18 }
 0x418   :  { %1819 = vmatprep.subr.bf16.mxu0 %v1747_v21 }
 0x41b   :  { %1820 = vmatpush1.bf16.msra.mxu0 %v1746_v49 }
 0x41c   :  { %1821 = vmatprep.subr.bf16.mxu0 %v1749_v22 }
 0x41f   :  { %1822 = vmatpush1.bf16.msra.mxu0 %v1748_v50 }
 0x420   :  { %1823 = vmatprep.subr.bf16.mxu0 %v1751_v25 }
 0x423   :  { %1824 = vmatpush1.bf16.msra.mxu0 %v1750_v26 }
 0x424   :  { %1825 = vmatprep.subr.bf16.mxu0 %v1753_v28 }
 0x427   :  { %1826 = vmatpush1.bf16.msra.mxu0 %v1752_v54 }
 0x428   :  { %1827 = vmatprep.subr.bf16.mxu0 %v1755_v30 }
 0x42b   :  { %1828 = vmatpush1.bf16.msra.mxu0 %v1754_v31 }
 0x42c   :  { %1829 = vmatprep.subr.bf16.mxu0 %v1757_v38 }
 0x42f   :  { %1830 = vmatpush1.bf16.msra.mxu0 %v1756_v40  ;;  %v1874_v40 = vld [vmem:[%s3042_s8] sm:$0x3] }
 0x432   :  { %1832 = vmatmul.mubr.bf16.vlgmr.msra.gmra.mrb[4].mxu0 %v2966_v37  ;;  %v2499_v37 = vld [vmem:[#allocation8 + $0x68] sm:$0xff]  }
 0x433   :  { %2376 = vmatprep.subr.bf16.mxu1 %v2499_v37  ;;  %v1898_v37 = vld [vmem:[%s3043_s9] sm:$0x3] }
 0x434   :  { %2377 = vmatpush3.bf16.msra.mxu1 %v2500_v55 }
 0x435   :  { %2378 = vmatprep.subr.bf16.mxu1 %v2501_v57 }
 0x438   :  { %2379 = vmatpush3.bf16.msra.mxu1 %v2502_v59 }
 0x439   :  { %2380 = vmatprep.subr.bf16.mxu1 %v2503_v60 }
 0x43c   :  { %2381 = vmatpush3.bf16.msra.mxu1 %v2504_v61 }
 0x505   :  { %v1833_v1 = vpop.f32.mrb[4].mxu0 }
 0x506   :  { %v1840_v32 = vrot.slane %v1833_v1, 4  ;;  %v1852_v34 = vmul.f32 %v1833_v1, %v1833_v1  ;;  %v1835_v10 = vpop.f32.mrb[5].mxu0 }
 0x507   :  { %v1846_v12 = vrot.slane %v1835_v10, 4  ;;  %v1853_v62 = vmul.f32 %v1835_v10, %v1835_v10  ;;  %v1837_v2 = vpop.f32.mrb[6].mxu0 }
 0x508   :  { %v1841_v56 = vadd.f32 %v1840_v32, %v1833_v1  ;;  %v1854_v58 = vrot.slane %v1852_v34, 4  ;;  %v1838_v4 = vpop.f32.mrb[7].mxu0  ;;  %v2612_v2 = vmov 0.0  }
 0x509   :  { %v1847_v6 = vadd.f32 %v1846_v12, %v1835_v10  ;;  %v1860_v3 = vrot.slane %v1853_v62, 4  ;;  %2397 = vmatprep.subr.bf16.mxu1 %v2612_v2  ;;  %v2510_v4 = vld [vmem:[%s3047_s13 + $0x28] sm:$0xff]  }
 0x50a   :  { %v1842_v5 = vrot.slane %v1841_v56, 2  ;;  %v1855_v39 = vadd.f32 %v1854_v58, %v1852_v34  ;;  %v2509_v58 = vld [vmem:[%s3047_s13 + $0x20] sm:$0xff]  }
 0x50b   :  { %v1848_v43 = vrot.slane %v1847_v6, 2  ;;  %v1861_v0 = vadd.f32 %v1860_v3, %v1853_v62  ;;  %v2505_v62 = vld [vmem:[%s3047_s13] sm:$0xff]   ;;  %v2512_v3 = vld [vmem:[%s3047_s13 + $0x38] sm:$0xff]  }
 0x50c   :  { %v1843_v19 = vadd.f32 %v1842_v5, %v1841_v56  ;;  %v1856_v33 = vrot.slane %v1855_v39, 2  ;;  %v2508_v56 = vld [vmem:[%s3047_s13 + $0x18] sm:$0xff]  }
 0x50d   :  { %v1849_v7 = vadd.f32 %v1848_v43, %v1847_v6  ;;  %v1862_v24 = vrot.slane %v1861_v0, 2  ;;  %v2511_v6 = vld [vmem:[%s3047_s13 + $0x30] sm:$0xff]  }
 0x50e   :  { %v1844_v8 = vrot.slane %v1843_v19, 1  ;;  %v1857_v9 = vadd.f32 %v1856_v33, %v1855_v39 }
 0x50f   :  { %v1850_v20 = vrot.slane %v1849_v7, 1  ;;  %v1863_v11 = vadd.f32 %v1862_v24, %v1861_v0 }
 0x510   :  { %v1845_v17 = vadd.f32 %v1844_v8, %v1843_v19  ;;  %v1858_v15 = vrot.slane %v1857_v9, 1 }
 0x511   :  { %v1864_v23 = vrot.slane %v1863_v11, 1  ;;  %v1851_v16 = vadd.f32 %v1850_v20, %v1849_v7 }
 0x512   :  { %v1859_v48 = vadd.f32 %v1858_v15, %v1857_v9  ;;  %v1866_v13 = vmul.f32 0.125, %v1845_v17 }
 0x513   :  { %v1865_v14 = vadd.f32 %v1864_v23, %v1863_v11  ;;  %v1867_v36 = vmul.f32 0.125, %v1851_v16 }
 0x514   :  { %v1868_v18 = vmul.f32 0.125, %v1859_v48  ;;  %v1870_v21 = vmul.f32 %v1866_v13, %v1866_v13 }
 0x515   :  { %v1869_v49 = vmul.f32 0.125, %v1865_v14  ;;  %v1871_v22 = vmul.f32 %v1867_v36, %v1867_v36 }
 0x516   :  { %v1872_v50 = vsub.f32 %v1868_v18, %v1870_v21 }
 0x517   :  { %v1873_v25 = vsub.f32 %v1869_v49, %v1871_v22  ;;  %v2135_v22 = vld [vmem:[%s3045_s11] sm:$0x1]  ;;  %s2614_s11 = smov [#allocation10]  }
 0x518   :  { %v1875_v26 = vadd.f32 1e-05, %v1872_v50  ;;  %s2276_s18 = sshll.u32 %s2614_s11, 4  ;;  %s2277_s18 = int_to_ptr.vmem [resolvable:$true] %s2276_s18 }
 0x519   :  { %v1876_v28 = vadd.f32 1e-05, %v1873_v25  ;;  %p2568_p3 = scmp.lt.s32.totalorder %s2277_s18, %s2277_s18 }
 0x51a   :  { %2513 = vrsqrt.f32 %v1875_v26  ;;  %v2139_v26 = vld [vmem:[%s3046_s12] sm:$0x1]  ;;  %s2563_s12 = scalar_lea.vmem %s2277_s18, 128 }
 0x51b   :  { %2515 = vrsqrt.f32 %v1876_v28  ;;  %p2564_p2 = scmp.ne.s32.totalorder %s2277_s18, %s2563_s12  ;;  %p2569_p4 = scmp.lt.s32.totalorder %s2563_s12, %s2563_s12 }
 0x51d   :  { %p2570_p5 = por %p2569_p4, %p2568_p3 }
 0x51f   :  { %p2571_p6 = pnand %p2570_p5, %p2564_p2 }
 0x524   :  { %v2514_v54 = vpop.eup %2513 }
 0x525   :  { %v2516_v30 = vpop.eup %2515 }
 0x526   :  { %v1881_v31 = vcombine.low %v2514_v54, %v2516_v30 }
 0x528   :  { %v1888_v38 = vrot.slane %v1881_v31, %v2812_v63 }
 0x52a   :  { %v1895_v41 = vrot.slane %v1888_v38, %v2812_v63 }
 0x52c   :  { %v1897_v42 = vmul.f32 %v1895_v41, %v1874_v40 }
 0x52e   :  { %v1903_v44 = vrot.slane %v1897_v42, %v2842_v27  ;;  %v1907_v45 = vrot.slane %v1897_v42, %v2845_v29 }
 0x530   :  { %v1910_v46 = vmul.f32 %v1903_v44, %v1866_v13  ;;  %v1911_v47 = vmul.f32 %v1907_v45, %v1867_v36  ;;  %v1932_v35 = vmul.f32 %v1907_v45, %v1835_v10  ;;  %v1931_v51 = vmul.f32 %v1903_v44, %v1833_v1  ;;  %v2355_v44 = vld [vmem:[%s3048_s14] ss:$0 sm:$0xff] }
 0x532   :  { %v1914_v52 = vcombine.low %v1910_v46, %v1911_v47 }
 0x534   :  { %v1921_v53 = vrot.slane %v1914_v52, %v2812_v63 }
 0x536   :  { %v1928_v55 = vrot.slane %v1921_v53, %v2812_v63  ;;  %v2506_v63 = vld [vmem:[%s3047_s13 + $0x8] sm:$0xff]  }
 0x538   :  { %v1930_v57 = vsub.f32 %v1898_v37, %v1928_v55 }
 0x53a   :  { %v1941_v59 = vrot.slane %v1930_v57, %v2845_v29  ;;  %v1937_v60 = vrot.slane %v1930_v57, %v2842_v27  ;;  %v2507_v29 = vld [vmem:[%s3047_s13 + $0x10] sm:$0xff]  }
 0x53c   :  { %v1945_v61 = vadd.f32 %v1941_v59, %v1932_v35  ;;  %v1944_v32 = vadd.f32 %v1937_v60, %v1931_v51 }
 0x53e   :  { %v1947_v34 = vmax.f32 %v1945_v61, 0.0  ;;  %v1946_v12 = vmax.f32 %v1944_v32, 0.0 }
 0x540   :  { %v1949_v10 = vpack.c.bf16 %v1947_v34, %v1947_v34  ;;  %v1948_v1 = vpack.c.bf16 %v1946_v12, %v1946_v12 }
 0x542   :  { %2110 = vmatprep.mubr.bf16.mxu1 %v1949_v10 }
 0x543   :  { %2111 = vmatmul.mubr.bf16.vlgmr.msra.gmra.mrb[20].mxu1 %v1948_v1 }
 0x544   :  { %2398 = vmatpush3.bf16.msra.mxu1 %v2505_v62  ;;  %2413 = vmatprep.mubr.msk.bf16.mxu1 %vm2613_vm1, %v2612_v2 }
 0x545   :  { %2399 = vmatprep.subr.bf16.mxu1 %v2612_v2 }
 0x548   :  { %2400 = vmatpush3.bf16.msra.mxu1 %v2506_v63 }
 0x549   :  { %2401 = vmatprep.subr.bf16.mxu1 %v2612_v2 }
 0x54c   :  { %2402 = vmatpush3.bf16.msra.mxu1 %v2507_v29 }
 0x54d   :  { %2403 = vmatprep.subr.bf16.mxu1 %v2612_v2 }
 0x550   :  { %2404 = vmatpush3.bf16.msra.mxu1 %v2508_v56 }
 0x551   :  { %2405 = vmatprep.subr.bf16.mxu1 %v2612_v2 }
 0x554   :  { %2406 = vmatpush3.bf16.msra.mxu1 %v2509_v58 }
 0x555   :  { %2407 = vmatprep.subr.bf16.mxu1 %v2612_v2 }
 0x558   :  { %2408 = vmatpush3.bf16.msra.mxu1 %v2510_v4 }
 0x559   :  { %2409 = vmatprep.subr.bf16.mxu1 %v2612_v2 }
 0x55c   :  { %2410 = vmatpush3.bf16.msra.mxu1 %v2511_v6 }
 0x55d   :  { %2411 = vmatprep.subr.bf16.mxu1 %v2612_v2 }
 0x560   :  { %2412 = vmatpush3.bf16.msra.mxu1 %v2512_v3 }
 0x616   :  { %v2382_v5 = vpop.f32.mrb[20].mxu1 }
 0x617   :  { %v2383_v39 = vpop.f32.mrb[21].mxu1 }
 0x618   :  { %v2384_v43 = vadd.f32 %v2383_v39, %v2382_v5  ;;  %v2385_v0 = vpop.f32.mrb[22].mxu1 }
 0x619   :  { %v2386_v19 = vpop.f32.mrb[23].mxu1 }
 0x61a   :  { %v2118_v33 = vrot.slane %v2384_v43, 4  ;;  %v2124_v7 = vmul.f32 %v2384_v43, %v2384_v43 }
 0x61c   :  { %v2119_v24 = vadd.f32 %v2384_v43, %v2118_v33  ;;  %v2125_v8 = vrot.slane %v2124_v7, 4 }
 0x61e   :  { %v2120_v9 = vrot.slane %v2119_v24, 2  ;;  %v2126_v20 = vadd.f32 %v2125_v8, %v2124_v7 }
 0x620   :  { %v2121_v11 = vadd.f32 %v2120_v9, %v2119_v24  ;;  %v2127_v17 = vrot.slane %v2126_v20, 2 }
 0x622   :  { %v2122_v15 = vrot.slane %v2121_v11, 1  ;;  %v2128_v23 = vadd.f32 %v2127_v17, %v2126_v20 }
 0x624   :  { %v2123_v16 = vadd.f32 %v2122_v15, %v2121_v11  ;;  %v2129_v48 = vrot.slane %v2128_v23, 1 }
 0x626   :  { %v2130_v13 = vadd.f32 %v2129_v48, %v2128_v23  ;;  %v2131_v14 = vmul.f32 0.125, %v2123_v16 }
 0x628   :  { %v2132_v36 = vmul.f32 0.125, %v2130_v13  ;;  %v2133_v18 = vmul.f32 %v2131_v14, %v2131_v14 }
 0x62a   :  { %v2134_v21 = vsub.f32 %v2132_v36, %v2133_v18 }
 0x62c   :  { %v2136_v49 = vadd.f32 1e-05, %v2134_v21 }
 0x62e   :  { %2517 = vrsqrt.f32 %v2136_v49 }
 0x638   :  { %v2518_v50 = vpop.eup %2517 }
 0x639   :  { %v2138_v25 = vmul.f32 %v2518_v50, %v2135_v22 }
 0x63b   :  { %v2146_v28 = vrot.slane %v2138_v25, %v2842_v27  ;;  %v2140_v54 = vmul.f32 %v2138_v25, %v2131_v14 }
 0x63d   :  { %v2141_v30 = vsub.f32 %v2139_v26, %v2140_v54  ;;  %v2148_v31 = vmul.f32 %v2384_v43, %v2146_v28 }
 0x63f   :  { %v2153_v38 = vrot.slane %v2141_v30, %v2842_v27 }
 0x641   :  { %v2155_v40 = vadd.f32 %v2153_v38, %v2148_v31 }
 0x643   :  { %v2156_v41 = vmax.f32 %v2155_v40, 0.0 }
 0x645   :  { %v2157_v42 = vpack.c.bf16 %v2156_v41, %v2156_v41 }
 0x647   :  { %2414 = vmatmul.mubr.bf16.vlgmr.msra.gmra.mrb[24].mxu1 %v2157_v42 }
 0x71a   :  { %v2263_v45 = vpop.f32.mrb[24].mxu1 }
 0x71b   :  { %v2264_v46 = vadd.f32 %v2355_v44, %v2263_v45  ;;  %v2415_v47 = vpop.f32.mrb[25].mxu1 }
 0x71c   :  { %v2266_v35 = vpop.f32.mrb[26].mxu1 }
 0x71d   :  { %2269 = vst [vmem:[#allocation10] sm:$0xff] %v2264_v46  ;;  %v2416_v51 = vpop.f32.mrb[27].mxu1 }
 0x71e   :  { %2574 = shalt.err (!%p2571_p6)
}
 0x71f   :  { %s2575_s14 = scalar_lea.hbm %s3049_s15, 128 }
 0x720   :  { %p2576_p7 = scmp.ne.s32.totalorder %s3049_s15, %s2575_s14  ;;  %p2579_p8 = scmp.lt.u32.totalorder %s2575_s14, %s3049_s15 }
 0x722   :  { %p2581_p9 = pnand %p2579_p8, %p2576_p7 }
 0x724   :  { %2584 = shalt.err (!%p2581_p9)
}
 0x725   :  { %2279 = dma.vmem_to_hbm [thread:$0]  %s2277_s18, 128, %s3049_s15, [#allocation7]  }
 0x726   :  { %2593 = dma.done.wait [#allocation7], 128  }
 0x727   :  { %2594 = vsyncadd [#allocation7], 4294967168 }
 0x728   :  { %2283 = vsyncpa [#allocation6], 1 }
 0x729   :  { %2284 = vsyncpa [#allocation9], 1 }
 0x72a   :  { %2285 = vsyncpa [#allocation7], 1 }
 0x72b   :  { %2286 = vsyncmov [#allocation4] }
 0x72e   :  { %s2287_s25 = vpop.sfrf %2286 }
 0x72f   :  { %p2364_p10 = scmp.ne.s32.totalorder %s2287_s25, 0 }
 0x731   :  { %2291 = shalt.err (%p2364_p10)  }
 0x732   :  { %2293 = vsyncmov [#allocation4 + $0x1] }
 0x735   :  { %s2294_s26 = vpop.sfrf %2293 }
 0x736   :  { %p2365_p11 = scmp.ne.s32.totalorder %s2294_s26, 0 }
 0x738   :  { %2298 = shalt.err (%p2365_p11)  }

</bundles_post_ra>
